<compile_context>
chip_gen: v7x
topology: tpu7x:2x2x1
jax: 0.10.0
libtpu: 0.0.40
codegen_flags: <defaults>
</compile_context>

<pallas_src>
import jax
import jax.numpy as jnp
from jax.experimental import pallas as pl
from jax.experimental.pallas import tpu as pltpu

INPUT_DIM = 3 * 384      # 1152
HIDDEN_DIM = 256
LATENT_DIM = 128
OUT_CHUNK = 384          # 1152 / 3, multiple of 128 (lane aligned)


def _round_up(x, m):
    return (x + m - 1) // m * m


def _ae_kernel(x_ref,
               w1_ref, b1_ref,
               w2_ref, b2_ref,
               w3_ref, b3_ref,
               w4_ref, b4_ref,
               out_ref):
    # x arrives already in bf16 (streamed at 2 B/elem). All dots accumulate in f32.
    x = x_ref[...]

    # ---- encoder ----
    h1 = jnp.dot(x, w1_ref[...], preferred_element_type=jnp.float32) + b1_ref[...]
    h1 = jnp.maximum(h1, 0.0).astype(jnp.bfloat16)                       # ReLU (f32 VPU)
    z = jnp.dot(h1, w2_ref[...], preferred_element_type=jnp.float32) + b2_ref[...]

    # ---- decoder ----
    h2 = jnp.dot(z.astype(jnp.bfloat16), w3_ref[...],
                 preferred_element_type=jnp.float32) + b3_ref[...]
    h2 = jnp.maximum(h2, 0.0).astype(jnp.bfloat16)                       # ReLU (f32 VPU)

    # Final Linear(256 -> 1152) chunked over output columns: keeps the live f32
    # accumulator at blk x 384 instead of blk x 1152 (cuts vreg spill / vst traffic).
    for c in range(INPUT_DIM // OUT_CHUNK):
        col = c * OUT_CHUNK
        xc = jnp.dot(h2, w4_ref[:, pl.ds(col, OUT_CHUNK)],
                     preferred_element_type=jnp.float32)
        xc = xc + b4_ref[:, pl.ds(col, OUT_CHUNK)]
        out_ref[:, pl.ds(col, OUT_CHUNK)] = xc.astype(out_ref.dtype)


def _device_tuning():
    """(blk_cap, vmem_limit_bytes) gated by generation; conservative fallback."""
    try:
        info = pltpu.get_tpu_info()
        vmem_cap = int(getattr(info, "vmem_capacity_bytes", 64 * 1024 * 1024))
    except Exception:
        vmem_cap = 64 * 1024 * 1024
    if vmem_cap >= 100 * 1024 * 1024:      # v5e / v6e: 128 MiB VMEM
        return 1024, 96 * 1024 * 1024
    return 512, 48 * 1024 * 1024           # v7x: 64 MiB VMEM


def _pick_block(B, blk_cap):
    if B <= 256:
        return B                           # block == full batch dim (always legal)
    # >= 2 grid steps (v7x 2-TC sharding + DMA/compute overlap), 128-row aligned
    return min(blk_cap, _round_up(pl.cdiv(B, 2), 128))


def text_autoencoder_forward(x, params, *, out_dtype=jnp.bfloat16):
    """x: [B, INPUT_DIM].  params: dict of (W, b) per layer (f32).  Returns bf16 by default."""
    B, D = x.shape
    assert D == INPUT_DIM

    blk_cap, vmem_limit = _device_tuning()
    blk = _pick_block(B, blk_cap)
    grid = (pl.cdiv(B, blk),)

    # Streamed I/O in bf16 (halves HBM traffic for this bandwidth-bound kernel).
    if x.dtype != jnp.bfloat16:
        x = x.astype(jnp.bfloat16)

    # bf16 weights -> native MXU input type + half the weight DMA bytes.
    w1 = params["w1"].astype(jnp.bfloat16)
    w2 = params["w2"].astype(jnp.bfloat16)
    w3 = params["w3"].astype(jnp.bfloat16)
    w4 = params["w4"].astype(jnp.bfloat16)
    b1, b2, b3, b4 = params["b1"], params["b2"], params["b3"], params["b4"]

    full = lambda arr: pl.BlockSpec(arr.shape, lambda i: (0, 0))

    flops = 2 * B * (INPUT_DIM * HIDDEN_DIM + HIDDEN_DIM * LATENT_DIM
                     + LATENT_DIM * HIDDEN_DIM + HIDDEN_DIM * INPUT_DIM)
    weight_bytes = sum(int(a.size) * a.dtype.itemsize
                       for a in (w1, w2, w3, w4, b1, b2, b3, b4))
    out_itemsize = jnp.dtype(out_dtype).itemsize
    bytes_accessed = (B * INPUT_DIM * x.dtype.itemsize
                      + B * INPUT_DIM * out_itemsize + weight_bytes)

    out = pl.pallas_call(
        _ae_kernel,
        out_shape=jax.ShapeDtypeStruct((B, INPUT_DIM), out_dtype),
        grid_spec=pltpu.PrefetchScalarGridSpec(
            num_scalar_prefetch=0,
            grid=grid,
            in_specs=[
                pl.BlockSpec((blk, INPUT_DIM), lambda i: (i, 0)),  # x tile
                full(w1), full(b1),
                full(w2), full(b2),
                full(w3), full(b3),
                full(w4), full(b4),
            ],
            out_specs=pl.BlockSpec((blk, INPUT_DIM), lambda i: (i, 0)),
        ),
        compiler_params=pltpu.CompilerParams(
            dimension_semantics=("parallel",),   # batch steps independent (megacore)
            vmem_limit_bytes=vmem_limit,
        ),
        cost_estimate=pl.CostEstimate(
            flops=flops, transcendentals=0, bytes_accessed=bytes_accessed),
    )(x, w1, b1, w2, b2, w3, b3, w4, b4)

    return out


def init_params(key):
    """Deterministic synthetic init (Kaiming-uniform-like scaling), f32."""
    def linear(key, fan_in, fan_out):
        kw, kb = jax.random.split(key)
        bound = 1.0 / jnp.sqrt(fan_in)
        # stored as [in, out] so the kernel computes x @ W + b
        w = jax.random.uniform(kw, (fan_in, fan_out), jnp.float32, -bound, bound)
        b = jax.random.uniform(kb, (1, fan_out), jnp.float32, -bound, bound)
        return w, b

    k1, k2, k3, k4 = jax.random.split(key, 4)
    w1, b1 = linear(k1, INPUT_DIM, HIDDEN_DIM)   # encoder Linear(1152, 256)
    w2, b2 = linear(k2, HIDDEN_DIM, LATENT_DIM)  # encoder Linear(256, 128)
    w3, b3 = linear(k3, LATENT_DIM, HIDDEN_DIM)  # decoder Linear(128, 256)
    w4, b4 = linear(k4, HIDDEN_DIM, INPUT_DIM)   # decoder Linear(256, 1152)
    return dict(w1=w1, b1=b1, w2=w2, b2=b2, w3=w3, b3=b3, w4=w4, b4=b4)


def reference_forward(x, p, out_dtype=jnp.bfloat16):
    """Pure-JAX reference mimicking the kernel's numerics (bf16 MXU inputs, f32 accum)."""
    bf = lambda a: a.astype(jnp.bfloat16)
    dot = lambda a, w: jnp.dot(bf(a), bf(w), preferred_element_type=jnp.float32)
    h1 = jnp.maximum(dot(x, p["w1"]) + p["b1"], 0.0)
    z = dot(h1, p["w2"]) + p["b2"]
    h2 = jnp.maximum(dot(z, p["w3"]) + p["b3"], 0.0)
    x_rec = dot(h2, p["w4"]) + p["b4"]
    return x_rec.astype(out_dtype).astype(jnp.float32)


if __name__ == "__main__":
    key = jax.random.PRNGKey(0)
    k_params, k_x = jax.random.split(key)
    params = init_params(k_params)

    # B=64: single full-batch block.  B=300: 2-step grid with a masked ragged edge block.
    for B in (64, 300):
        kx = jax.random.fold_in(k_x, B)
        x = jax.random.normal(kx, (B, INPUT_DIM), jnp.float32)

        out = jax.block_until_ready(text_autoencoder_forward(x, params))
        ref = reference_forward(x, params)

        assert out.shape == (B, INPUT_DIM)
        assert out.dtype == jnp.bfloat16
        assert jnp.allclose(out.astype(jnp.float32), ref, atol=2e-2, rtol=2e-2), \
            f"mismatch vs JAX reference at B={B}"

    print("KERNEL_OK")
</pallas_src>

<mosaic_0001>
module attributes {stable_mosaic.version = 11 : i64} {
  func.func @_ae_kernel(%arg0: i32, %arg1: memref<64x1152xbf16, #tpu.memory_space<vmem>>, %arg2: memref<1152x256xbf16, #tpu.memory_space<vmem>>, %arg3: memref<1x256xf32, #tpu.memory_space<vmem>>, %arg4: memref<256x128xbf16, #tpu.memory_space<vmem>>, %arg5: memref<1x128xf32, #tpu.memory_space<vmem>>, %arg6: memref<128x256xbf16, #tpu.memory_space<vmem>>, %arg7: memref<1x256xf32, #tpu.memory_space<vmem>>, %arg8: memref<256x1152xbf16, #tpu.memory_space<vmem>>, %arg9: memref<1x1152xf32, #tpu.memory_space<vmem>>, %arg10: memref<64x1152xbf16, #tpu.memory_space<vmem>>) attributes {dimension_semantics = [#tpu.dimension_semantics<parallel>], iteration_bounds = array<i64: 1>, scalar_prefetch = 0 : i64, scratch_operands = 0 : i64, tpu.core_type = #tpu.core_type<tc>, window_params = [{transform_indices = @transform_0, window_bounds = array<i64: 64, 1152>}, {pipeline_mode = #tpu.pipeline_mode<synchronous>, transform_indices = @transform_1, window_bounds = array<i64: 1152, 256>}, {pipeline_mode = #tpu.pipeline_mode<synchronous>, transform_indices = @transform_2, window_bounds = array<i64: 1, 256>}, {pipeline_mode = #tpu.pipeline_mode<synchronous>, transform_indices = @transform_3, window_bounds = array<i64: 256, 128>}, {pipeline_mode = #tpu.pipeline_mode<synchronous>, transform_indices = @transform_4, window_bounds = array<i64: 1, 128>}, {pipeline_mode = #tpu.pipeline_mode<synchronous>, transform_indices = @transform_5, window_bounds = array<i64: 128, 256>}, {pipeline_mode = #tpu.pipeline_mode<synchronous>, transform_indices = @transform_6, window_bounds = array<i64: 1, 256>}, {pipeline_mode = #tpu.pipeline_mode<synchronous>, transform_indices = @transform_7, window_bounds = array<i64: 256, 1152>}, {pipeline_mode = #tpu.pipeline_mode<synchronous>, transform_indices = @transform_8, window_bounds = array<i64: 1, 1152>}, {transform_indices = @transform_9, window_bounds = array<i64: 64, 1152>}]} {
    %c0 = arith.constant 0 : index
    %c0_0 = arith.constant 0 : index
    %0 = vector.load %arg1[%c0, %c0_0] : memref<64x1152xbf16, #tpu.memory_space<vmem>>, vector<64x1152xbf16>
    %c0_1 = arith.constant 0 : index
    %c0_2 = arith.constant 0 : index
    %1 = vector.load %arg2[%c0_1, %c0_2] : memref<1152x256xbf16, #tpu.memory_space<vmem>>, vector<1152x256xbf16>
    %cst = arith.constant dense<0.000000e+00> : vector<64x256xf32>
    %2 = tpu.matmul %0, %1, %cst {dimension_numbers = #tpu.dot_dimension_numbers<[1], [0], [0], [1], [0, 0, 1, 1], [], []>} : vector<64x1152xbf16>, vector<1152x256xbf16>, vector<64x256xf32> -> vector<64x256xf32>
    %c0_3 = arith.constant 0 : index
    %c0_4 = arith.constant 0 : index
    %3 = vector.load %arg3[%c0_3, %c0_4] : memref<1x256xf32, #tpu.memory_space<vmem>>, vector<1x256xf32>
    %4 = vector.broadcast %3 : vector<1x256xf32> to vector<64x256xf32>
    %5 = arith.addf %2, %4 : vector<64x256xf32>
    %cst_5 = arith.constant 0.000000e+00 : f32
    %6 = vector.broadcast %cst_5 : f32 to vector<64x256xf32>
    %7 = arith.maximumf %5, %6 : vector<64x256xf32>
    %8 = arith.truncf %7 : vector<64x256xf32> to vector<64x256xbf16>
    %c0_6 = arith.constant 0 : index
    %c0_7 = arith.constant 0 : index
    %9 = vector.load %arg4[%c0_6, %c0_7] : memref<256x128xbf16, #tpu.memory_space<vmem>>, vector<256x128xbf16>
    %cst_8 = arith.constant dense<0.000000e+00> : vector<64x128xf32>
    %10 = tpu.matmul %8, %9, %cst_8 {dimension_numbers = #tpu.dot_dimension_numbers<[1], [0], [0], [1], [0, 0, 1, 1], [], []>} : vector<64x256xbf16>, vector<256x128xbf16>, vector<64x128xf32> -> vector<64x128xf32>
    %c0_9 = arith.constant 0 : index
    %c0_10 = arith.constant 0 : index
    %11 = vector.load %arg5[%c0_9, %c0_10] : memref<1x128xf32, #tpu.memory_space<vmem>>, vector<1x128xf32>
    %12 = vector.broadcast %11 : vector<1x128xf32> to vector<64x128xf32>
    %13 = arith.addf %10, %12 : vector<64x128xf32>
    %14 = arith.truncf %13 : vector<64x128xf32> to vector<64x128xbf16>
    %c0_11 = arith.constant 0 : index
    %c0_12 = arith.constant 0 : index
    %15 = vector.load %arg6[%c0_11, %c0_12] : memref<128x256xbf16, #tpu.memory_space<vmem>>, vector<128x256xbf16>
    %cst_13 = arith.constant dense<0.000000e+00> : vector<64x256xf32>
    %16 = tpu.matmul %14, %15, %cst_13 {dimension_numbers = #tpu.dot_dimension_numbers<[1], [0], [0], [1], [0, 0, 1, 1], [], []>} : vector<64x128xbf16>, vector<128x256xbf16>, vector<64x256xf32> -> vector<64x256xf32>
    %c0_14 = arith.constant 0 : index
    %c0_15 = arith.constant 0 : index
    %17 = vector.load %arg7[%c0_14, %c0_15] : memref<1x256xf32, #tpu.memory_space<vmem>>, vector<1x256xf32>
    %18 = vector.broadcast %17 : vector<1x256xf32> to vector<64x256xf32>
    %19 = arith.addf %16, %18 : vector<64x256xf32>
    %cst_16 = arith.constant 0.000000e+00 : f32
    %20 = vector.broadcast %cst_16 : f32 to vector<64x256xf32>
    %21 = arith.maximumf %19, %20 : vector<64x256xf32>
    %22 = arith.truncf %21 : vector<64x256xf32> to vector<64x256xbf16>
    %c0_17 = arith.constant 0 : index
    %c0_18 = arith.constant 0 : index
    %23 = vector.load %arg8[%c0_17, %c0_18] : memref<256x1152xbf16, #tpu.memory_space<vmem>>, vector<256x384xbf16>
    %cst_19 = arith.constant dense<0.000000e+00> : vector<64x384xf32>
    %24 = tpu.matmul %22, %23, %cst_19 {dimension_numbers = #tpu.dot_dimension_numbers<[1], [0], [0], [1], [0, 0, 1, 1], [], []>} : vector<64x256xbf16>, vector<256x384xbf16>, vector<64x384xf32> -> vector<64x384xf32>
    %c0_20 = arith.constant 0 : index
    %c0_21 = arith.constant 0 : index
    %25 = vector.load %arg9[%c0_20, %c0_21] : memref<1x1152xf32, #tpu.memory_space<vmem>>, vector<1x384xf32>
    %26 = vector.broadcast %25 : vector<1x384xf32> to vector<64x384xf32>
    %27 = arith.addf %24, %26 : vector<64x384xf32>
    %28 = arith.truncf %27 : vector<64x384xf32> to vector<64x384xbf16>
    %c0_22 = arith.constant 0 : index
    %c0_23 = arith.constant 0 : index
    %29 = vector.load %arg10[%c0_22, %c0_23] : memref<64x1152xbf16, #tpu.memory_space<vmem>>, vector<64x384xbf16>
    tpu.vector_store %arg10[%c0_22, %c0_23], %28 {strides = array<i32>} : memref<64x1152xbf16, #tpu.memory_space<vmem>>, vector<64x384xbf16>,
    %c0_24 = arith.constant 0 : index
    %c384 = arith.constant 384 : index
    %30 = vector.load %arg8[%c0_24, %c384] : memref<256x1152xbf16, #tpu.memory_space<vmem>>, vector<256x384xbf16>
    %cst_25 = arith.constant dense<0.000000e+00> : vector<64x384xf32>
    %31 = tpu.matmul %22, %30, %cst_25 {dimension_numbers = #tpu.dot_dimension_numbers<[1], [0], [0], [1], [0, 0, 1, 1], [], []>} : vector<64x256xbf16>, vector<256x384xbf16>, vector<64x384xf32> -> vector<64x384xf32>
    %c0_26 = arith.constant 0 : index
    %c384_27 = arith.constant 384 : index
    %32 = vector.load %arg9[%c0_26, %c384_27] : memref<1x1152xf32, #tpu.memory_space<vmem>>, vector<1x384xf32>
    %33 = vector.broadcast %32 : vector<1x384xf32> to vector<64x384xf32>
    %34 = arith.addf %31, %33 : vector<64x384xf32>
    %35 = arith.truncf %34 : vector<64x384xf32> to vector<64x384xbf16>
    %c0_28 = arith.constant 0 : index
    %c384_29 = arith.constant 384 : index
    %36 = vector.load %arg10[%c0_28, %c384_29] : memref<64x1152xbf16, #tpu.memory_space<vmem>>, vector<64x384xbf16>
    tpu.vector_store %arg10[%c0_28, %c384_29], %35 {strides = array<i32>} : memref<64x1152xbf16, #tpu.memory_space<vmem>>, vector<64x384xbf16>,
    %c0_30 = arith.constant 0 : index
    %c768 = arith.constant 768 : index
    %37 = vector.load %arg8[%c0_30, %c768] : memref<256x1152xbf16, #tpu.memory_space<vmem>>, vector<256x384xbf16>
    %cst_31 = arith.constant dense<0.000000e+00> : vector<64x384xf32>
    %38 = tpu.matmul %22, %37, %cst_31 {dimension_numbers = #tpu.dot_dimension_numbers<[1], [0], [0], [1], [0, 0, 1, 1], [], []>} : vector<64x256xbf16>, vector<256x384xbf16>, vector<64x384xf32> -> vector<64x384xf32>
    %c0_32 = arith.constant 0 : index
    %c768_33 = arith.constant 768 : index
    %39 = vector.load %arg9[%c0_32, %c768_33] : memref<1x1152xf32, #tpu.memory_space<vmem>>, vector<1x384xf32>
    %40 = vector.broadcast %39 : vector<1x384xf32> to vector<64x384xf32>
    %41 = arith.addf %38, %40 : vector<64x384xf32>
    %42 = arith.truncf %41 : vector<64x384xf32> to vector<64x384xbf16>
    %c0_34 = arith.constant 0 : index
    %c768_35 = arith.constant 768 : index
    %43 = vector.load %arg10[%c0_34, %c768_35] : memref<64x1152xbf16, #tpu.memory_space<vmem>>, vector<64x384xbf16>
    tpu.vector_store %arg10[%c0_34, %c768_35], %42 {strides = array<i32>} : memref<64x1152xbf16, #tpu.memory_space<vmem>>, vector<64x384xbf16>,
    return
  }
  func.func @transform_0(%arg0: i32) -> (i32, i32) {
    %c0_i32 = arith.constant 0 : i32
    %c0_i32_0 = arith.constant 0 : i32
    return %arg0, %c0_i32 : i32, i32
  }
  func.func @transform_1(%arg0: i32) -> (i32, i32) {
    %c0_i32 = arith.constant 0 : i32
    %c0_i32_0 = arith.constant 0 : i32
    %c0_i32_1 = arith.constant 0 : i32
    return %c0_i32, %c0_i32_0 : i32, i32
  }
  func.func @transform_2(%arg0: i32) -> (i32, i32) {
    %c0_i32 = arith.constant 0 : i32
    %c0_i32_0 = arith.constant 0 : i32
    %c0_i32_1 = arith.constant 0 : i32
    return %c0_i32, %c0_i32_0 : i32, i32
  }
  func.func @transform_3(%arg0: i32) -> (i32, i32) {
    %c0_i32 = arith.constant 0 : i32
    %c0_i32_0 = arith.constant 0 : i32
    %c0_i32_1 = arith.constant 0 : i32
    return %c0_i32, %c0_i32_0 : i32, i32
  }
  func.func @transform_4(%arg0: i32) -> (i32, i32) {
    %c0_i32 = arith.constant 0 : i32
    %c0_i32_0 = arith.constant 0 : i32
    %c0_i32_1 = arith.constant 0 : i32
    return %c0_i32, %c0_i32_0 : i32, i32
  }
  func.func @transform_5(%arg0: i32) -> (i32, i32) {
    %c0_i32 = arith.constant 0 : i32
    %c0_i32_0 = arith.constant 0 : i32
    %c0_i32_1 = arith.constant 0 : i32
    return %c0_i32, %c0_i32_0 : i32, i32
  }
  func.func @transform_6(%arg0: i32) -> (i32, i32) {
    %c0_i32 = arith.constant 0 : i32
    %c0_i32_0 = arith.constant 0 : i32
    %c0_i32_1 = arith.constant 0 : i32
    return %c0_i32, %c0_i32_0 : i32, i32
  }
  func.func @transform_7(%arg0: i32) -> (i32, i32) {
    %c0_i32 = arith.constant 0 : i32
    %c0_i32_0 = arith.constant 0 : i32
    %c0_i32_1 = arith.constant 0 : i32
    return %c0_i32, %c0_i32_0 : i32, i32
  }
  func.func @transform_8(%arg0: i32) -> (i32, i32) {
    %c0_i32 = arith.constant 0 : i32
    %c0_i32_0 = arith.constant 0 : i32
    %c0_i32_1 = arith.constant 0 : i32
    return %c0_i32, %c0_i32_0 : i32, i32
  }
  func.func @transform_9(%arg0: i32) -> (i32, i32) {
    %c0_i32 = arith.constant 0 : i32
    %c0_i32_0 = arith.constant 0 : i32
    return %arg0, %c0_i32 : i32, i32
  }
}

</mosaic_0001>

<bundles_post_ra>
// kernel: tpu_custom_call.1
= control target key start
LH: loop header
LB: loop body
LE: loop exit
PB: predicated region body
PF: predicated region fallthrough
CT: control target
= control target key end

     0   :  { %14 = vsyncpa [#allocation3], 0  ;;  %s5416_s0 = inlined_call_operand.hbm [shape: bf16[64,1152], index: 0, kind: input, shape index: {}]   ;;  %s5417_s1 = inlined_call_operand.hbm [shape: bf16[1152,256], index: 1, kind: input, shape index: {}]   ;;  %s5418_s2 = inlined_call_operand.vmem [shape: f32[1,256], index: 2, kind: input, shape index: {}]   ;;  %s5419_s3 = inlined_call_operand.hbm [shape: bf16[256,128], index: 3, kind: input, shape index: {}]   ;;  %s5420_s4 = inlined_call_operand.vmem [shape: f32[1,128], index: 4, kind: input, shape index: {}]   ;;  %s5421_s5 = inlined_call_operand.hbm [shape: bf16[128,256], index: 5, kind: input, shape index: {}]   ;;  %s5422_s6 = inlined_call_operand.vmem [shape: f32[1,256], index: 6, kind: input, shape index: {}]   ;;  %s5423_s7 = inlined_call_operand.hbm [shape: bf16[256,1152], index: 7, kind: input, shape index: {}]   ;;  %s5424_s8 = inlined_call_operand.vmem [shape: f32[1,1152], index: 8, kind: input, shape index: {}]   ;;  %s5425_s9 = inlined_call_operand.hbm [shape: bf16[64,1152], index: 9, kind: output, shape index: {}]  }
   0x1   :  { %15 = vsyncpa [#allocation6], 0 }
   0x2   :  { %16 = vsyncpa [#allocation9], 0 }
   0x3   :  { %17 = vsyncpa [#allocation4], 0  ;;  %s5078_s30 = smov [#allocation5]   ;;  %s4938_s13 = scalar_lea.hbm %s5417_s1, 18432 }
   0x4   :  { %s35_s10 = sshll.u32 %s5078_s30, 4  ;;  %p4939_p0 = scmp.ne.s32.totalorder %s5417_s1, %s4938_s13  ;;  %s36_s10 = int_to_ptr.vmem [resolvable:$true] %s35_s10 }
   0x5   :  { %p4942_p1 = scmp.lt.u32.totalorder %s4938_s13, %s5417_s1 }
   0x7   :  { %p4944_p2 = pnand %p4942_p1, %p4939_p0 }
   0x9   :  { %4947 = shalt.err (!%p4944_p2)
}
   0xa   :  { %s4948_s18 = scalar_lea.vmem %s36_s10, 18432  ;;  %p4953_p4 = scmp.lt.s32.totalorder %s36_s10, %s36_s10 }
   0xb   :  { %p4949_p3 = scmp.ne.s32.totalorder %s36_s10, %s4948_s18  ;;  %p4954_p5 = scmp.lt.s32.totalorder %s4948_s18, %s4948_s18 }
   0xd   :  { %p4955_p6 = por %p4954_p5, %p4953_p4 }
   0xf   :  { %p4956_p7 = pnand %p4955_p6, %p4949_p3 }
  0x11   :  { %4959 = shalt.err (!%p4956_p7)
}
  0x12   :  { %s5079_s19 = smov 128   ;;  %s5080_s20 = smov 8  }
  0x13   :  { %41 = dma.hbm_to_vmem [thread:$0]  %s5417_s1, 18432, %s36_s10, [#allocation6], %s5079_s19, %s5079_s19, %s5080_s20  }
  0x14   :  { %s5081_s23 = smov [#allocation8]   ;;  %s5082_s25 = smov [#allocation2]  }
  0x15   :  { %s63_s24 = sshll.u32 %s5081_s23, 4  ;;  %s23_s26 = sshll.u32 %s5082_s25, 4  ;;  %s64_s24 = int_to_ptr.vmem [resolvable:$true] %s63_s24  ;;  %s24_s26 = int_to_ptr.vmem [resolvable:$true] %s23_s26 }
  0x16   :  { %s4960_s29 = scalar_lea.hbm %s5421_s5, 2048 }
  0x17   :  { %p4961_p8 = scmp.ne.s32.totalorder %s5421_s5, %s4960_s29  ;;  %p4964_p9 = scmp.lt.u32.totalorder %s4960_s29, %s5421_s5 }
  0x19   :  { %p4966_p10 = pnand %p4964_p9, %p4961_p8 }
  0x1b   :  { %4969 = shalt.err (!%p4966_p10)
}
  0x1c   :  { %s4970_s1 = scalar_lea.vmem %s64_s24, 2048  ;;  %p4975_p12 = scmp.lt.s32.totalorder %s64_s24, %s64_s24 }
  0x1d   :  { %p4971_p11 = scmp.ne.s32.totalorder %s64_s24, %s4970_s1  ;;  %p4976_p13 = scmp.lt.s32.totalorder %s4970_s1, %s4970_s1 }
  0x1f   :  { %p4977_p0 = por %p4976_p13, %p4975_p12 }
  0x21   :  { %p4978_p1 = pnand %p4977_p0, %p4971_p11 }
  0x23   :  { %4981 = shalt.err (!%p4978_p1)
}
  0x24   :  { %69 = dma.hbm_to_vmem [thread:$0]  %s5421_s5, 2048, %s64_s24, [#allocation9], %s5079_s19, %s5079_s19, %s5080_s20  }
  0x25   :  { %s4982_s17 = scalar_lea.hbm %s5416_s0, 4608 }
  0x26   :  { %p4983_p2 = scmp.ne.s32.totalorder %s5416_s0, %s4982_s17  ;;  %p4986_p3 = scmp.lt.u32.totalorder %s4982_s17, %s5416_s0 }
  0x28   :  { %p4988_p4 = pnand %p4986_p3, %p4983_p2 }
  0x2a   :  { %4991 = shalt.err (!%p4988_p4)
}
  0x2b   :  { %s4992_s25 = scalar_lea.vmem %s24_s26, 4608  ;;  %p4997_p6 = scmp.lt.s32.totalorder %s24_s26, %s24_s26 }
  0x2c   :  { %p4993_p5 = scmp.ne.s32.totalorder %s24_s26, %s4992_s25  ;;  %p4998_p7 = scmp.lt.s32.totalorder %s4992_s25, %s4992_s25 }
  0x2e   :  { %p4999_p8 = por %p4998_p7, %p4997_p6 }
  0x30   :  { %p5000_p9 = pnand %p4999_p8, %p4993_p5 }
  0x32   :  { %5003 = shalt.err (!%p5000_p9)
}
  0x33   :  { %s5083_s5 = smov 576   ;;  %s5084_s19 = smov 36  }
  0x34   :  { %29 = dma.hbm_to_vmem [thread:$0]  %s5416_s0, 4608, %s24_s26, [#allocation3], %s5083_s5, %s5083_s5, %s5084_s19  }
  0x35   :  { %s5085_s27 = smov [#allocation7]   ;;  %s5004_s11 = scalar_lea.hbm %s5419_s3, 2048 }
  0x36   :  { %s49_s28 = sshll.u32 %s5085_s27, 4  ;;  %p5005_p10 = scmp.ne.s32.totalorder %s5419_s3, %s5004_s11  ;;  %s50_s28 = int_to_ptr.vmem [resolvable:$true] %s49_s28 }
  0x37   :  { %p5008_p11 = scmp.lt.u32.totalorder %s5004_s11, %s5419_s3 }
  0x39   :  { %p5010_p12 = pnand %p5008_p11, %p5005_p10 }
  0x3b   :  { %5013 = shalt.err (!%p5010_p12)
}
  0x3c   :  { %s5014_s14 = scalar_lea.vmem %s50_s28, 2048  ;;  %p5019_p0 = scmp.lt.s32.totalorder %s50_s28, %s50_s28 }
  0x3d   :  { %p5015_p13 = scmp.ne.s32.totalorder %s50_s28, %s5014_s14  ;;  %p5020_p1 = scmp.lt.s32.totalorder %s5014_s14, %s5014_s14 }
  0x3f   :  { %p5021_p2 = por %p5020_p1, %p5019_p0 }
  0x41   :  { %p5022_p3 = pnand %p5021_p2, %p5015_p13 }
  0x43   :  { %5025 = shalt.err (!%p5022_p3)
}
  0x44   :  { %s5086_s0 = smov 64   ;;  %s5087_s26 = smov 4  }
  0x45   :  { %55 = dma.hbm_to_vmem [thread:$0]  %s5419_s3, 2048, %s50_s28, [#allocation6], %s5086_s0, %s5086_s0, %s5087_s26  }
  0x46   :  { %s5088_s17 = smov [#allocation10]   ;;  %s5026_s23 = scalar_lea.hbm %s5423_s7, 18432 }
  0x47   :  { %s77_s18 = sshll.u32 %s5088_s17, 4  ;;  %p5027_p4 = scmp.ne.s32.totalorder %s5423_s7, %s5026_s23  ;;  %s78_s18 = int_to_ptr.vmem [resolvable:$true] %s77_s18 }
  0x48   :  { %p5030_p5 = scmp.lt.u32.totalorder %s5026_s23, %s5423_s7 }
  0x4a   :  { %p5032_p6 = pnand %p5030_p5, %p5027_p4 }
  0x4c   :  { %5035 = shalt.err (!%p5032_p6)
}
  0x4d   :  { %s5036_s29 = scalar_lea.vmem %s78_s18, 18432  ;;  %p5041_p8 = scmp.lt.s32.totalorder %s78_s18, %s78_s18 }
  0x4e   :  { %p5037_p7 = scmp.ne.s32.totalorder %s78_s18, %s5036_s29  ;;  %p5042_p9 = scmp.lt.s32.totalorder %s5036_s29, %s5036_s29 }
  0x50   :  { %p5043_p10 = por %p5042_p9, %p5041_p8 }
  0x52   :  { %p5044_p11 = pnand %p5043_p10, %p5037_p7 }
  0x54   :  { %5047 = shalt.err (!%p5044_p11)
}
  0x55   :  { %83 = dma.hbm_to_vmem [thread:$0]  %s5423_s7, 18432, %s78_s18, [#allocation9], %s5083_s5, %s5083_s5, %s5084_s19  }
  0x56   :  { %5070 = dma.done.wait [#allocation3], 4608  }
  0x57   :  { %5071 = vsyncadd [#allocation3], 4294962688 }
  0x58   :  { %5072 = dma.done.wait [#allocation6], 20480  }
  0x59   :  { %5073 = vsyncadd [#allocation6], 4294946816 }
  0x5a   :  { %5074 = dma.done.wait [#allocation9], 20480  }
  0x5b   :  { %5075 = vsyncadd [#allocation9], 4294946816  ;;  %v4438_v0 = vld [vmem:[#allocation5 + $0x4] ss:$8 sps:$4 sm:$0xff]   ;;  %v4440_v1 = vld [vmem:[#allocation5] ss:$8 sps:$4 sm:$0xff]  }
  0x5c   :  { %1202 = vmatprep.subr.bf16.mxu0 %v4438_v0  ;;  %v4441_v2 = vld [vmem:[#allocation5 + $0x14] ss:$8 sps:$4 sm:$0xff]   ;;  %v4443_v3 = vld [vmem:[#allocation5 + $0x10] ss:$8 sps:$4 sm:$0xff]   ;;  %v4444_v4 = vld [vmem:[#allocation5 + $0x24] ss:$8 sps:$4 sm:$0xff]  }
  0x5d   :  { %1203 = vmatpush1.bf16.msra.mxu0 %v4440_v1  ;;  %v4446_v5 = vld [vmem:[#allocation5 + $0x20] ss:$8 sps:$4 sm:$0xff]   ;;  %v4447_v6 = vld [vmem:[#allocation5 + $0x34] ss:$8 sps:$4 sm:$0xff]   ;;  %v4449_v7 = vld [vmem:[#allocation5 + $0x30] ss:$8 sps:$4 sm:$0xff]  }
  0x5e   :  { %1204 = vmatprep.subr.bf16.mxu0 %v4441_v2  ;;  %v4450_v8 = vld [vmem:[#allocation5 + $0x44] ss:$8 sps:$4 sm:$0xff]   ;;  %v4452_v9 = vld [vmem:[#allocation5 + $0x40] ss:$8 sps:$4 sm:$0xff]   ;;  %v4453_v10 = vld [vmem:[#allocation5 + $0x54] ss:$8 sps:$4 sm:$0xff]  }
  0x5f   :  { %v4455_v11 = vld [vmem:[#allocation5 + $0x50] ss:$8 sps:$4 sm:$0xff]   ;;  %v4456_v12 = vld [vmem:[#allocation5 + $0x64] ss:$8 sps:$4 sm:$0xff]   ;;  %v4458_v14 = vld [vmem:[#allocation5 + $0x60] ss:$8 sps:$4 sm:$0xff]  }
  0x60   :  { %v4488_v13 = vld [vmem:[#allocation2 + $0x4] ss:$36 sps:$4 sm:$0xff]   ;;  %v4459_v15 = vld [vmem:[#allocation5 + $0x74] ss:$8 sps:$4 sm:$0xff]   ;;  %v4461_v16 = vld [vmem:[#allocation5 + $0x70] ss:$8 sps:$4 sm:$0xff]  }
  0x61   :  { %1205 = vmatpush1.bf16.msra.mxu0 %v4443_v3  ;;  %1234 = vmatprep.mubr.bf16.mxu0 %v4488_v13  ;;  %v4462_v17 = vld [vmem:[#allocation5 + $0x84] ss:$8 sps:$4 sm:$0xff]   ;;  %v4464_v18 = vld [vmem:[#allocation5 + $0x80] ss:$8 sps:$4 sm:$0xff]   ;;  %v4465_v19 = vld [vmem:[#allocation5 + $0x94] ss:$8 sps:$4 sm:$0xff]  }
  0x62   :  { %1206 = vmatprep.subr.bf16.mxu0 %v4444_v4  ;;  %v4467_v20 = vld [vmem:[#allocation5 + $0x90] ss:$8 sps:$4 sm:$0xff]   ;;  %v4468_v21 = vld [vmem:[#allocation5 + $0xa4] ss:$8 sps:$4 sm:$0xff]   ;;  %v4470_v22 = vld [vmem:[#allocation5 + $0xa0] ss:$8 sps:$4 sm:$0xff]  }
  0x63   :  { %v4471_v23 = vld [vmem:[#allocation5 + $0xb4] ss:$8 sps:$4 sm:$0xff]   ;;  %v4473_v24 = vld [vmem:[#allocation5 + $0xb0] ss:$8 sps:$4 sm:$0xff]   ;;  %v4474_v25 = vld [vmem:[#allocation5 + $0xc4] ss:$8 sps:$4 sm:$0xff]  }
  0x64   :  { %v4476_v26 = vld [vmem:[#allocation5 + $0xc0] ss:$8 sps:$4 sm:$0xff]   ;;  %v4477_v27 = vld [vmem:[#allocation5 + $0xd4] ss:$8 sps:$4 sm:$0xff]   ;;  %v4479_v28 = vld [vmem:[#allocation5 + $0xd0] ss:$8 sps:$4 sm:$0xff]  }
  0x65   :  { %1207 = vmatpush1.bf16.msra.mxu0 %v4446_v5  ;;  %v4480_v29 = vld [vmem:[#allocation5 + $0xe4] ss:$8 sps:$4 sm:$0xff]   ;;  %v4482_v30 = vld [vmem:[#allocation5 + $0xe0] ss:$8 sps:$4 sm:$0xff]   ;;  %v4483_v31 = vld [vmem:[#allocation5 + $0xf4] ss:$8 sps:$4 sm:$0xff]  }
  0x66   :  { %1208 = vmatprep.subr.bf16.mxu0 %v4447_v6  ;;  %v4485_v32 = vld [vmem:[#allocation5 + $0xf0] ss:$8 sps:$4 sm:$0xff]   ;;  %v4491_v33 = vld [vmem:[#allocation5 + $0x104] ss:$8 sps:$4 sm:$0xff]   ;;  %v4489_v35 = vld [vmem:[#allocation5 + $0x100] ss:$8 sps:$4 sm:$0xff]  }
  0x67   :  { %v4486_v34 = vld [vmem:[#allocation2] ss:$36 sps:$4 sm:$0xff]   ;;  %v4519_v36 = vld [vmem:[#allocation2 + $0x4c] ss:$36 sps:$4 sm:$0xff]   ;;  %v4494_v37 = vld [vmem:[#allocation5 + $0x114] ss:$8 sps:$4 sm:$0xff]  }
  0x68   :  { %v4492_v38 = vld [vmem:[#allocation5 + $0x110] ss:$8 sps:$4 sm:$0xff]   ;;  %v4497_v39 = vld [vmem:[#allocation5 + $0x124] ss:$8 sps:$4 sm:$0xff]   ;;  %v4495_v40 = vld [vmem:[#allocation5 + $0x120] ss:$8 sps:$4 sm:$0xff]  }
  0x69   :  { %1209 = vmatpush1.bf16.msra.mxu0 %v4449_v7  ;;  %v4524_v41 = vld [vmem:[#allocation2 + $0x48] ss:$36 sps:$4 sm:$0xff]   ;;  %v4528_v42 = vld [vmem:[#allocation2 + $0x94] ss:$36 sps:$4 sm:$0xff]   ;;  %v4537_v48 = vld [vmem:[#allocation2 + $0xdc] ss:$36 sps:$4 sm:$0xff]  }
  0x6a   :  { %1210 = vmatprep.subr.bf16.mxu0 %v4450_v8  ;;  %v4500_v43 = vld [vmem:[#allocation5 + $0x134] ss:$8 sps:$4 sm:$0xff]   ;;  %v4498_v44 = vld [vmem:[#allocation5 + $0x130] ss:$8 sps:$4 sm:$0xff]   ;;  %v4503_v45 = vld [vmem:[#allocation5 + $0x144] ss:$8 sps:$4 sm:$0xff]  }
  0x6b   :  { %v4533_v46 = vld [vmem:[#allocation2 + $0x90] ss:$36 sps:$4 sm:$0xff]   ;;  %v4501_v47 = vld [vmem:[#allocation5 + $0x140] ss:$8 sps:$4 sm:$0xff]   ;;  %v4509_v51 = vld [vmem:[#allocation5 + $0x164] ss:$8 sps:$4 sm:$0xff]  }
  0x6c   :  { %v4506_v49 = vld [vmem:[#allocation5 + $0x154] ss:$8 sps:$4 sm:$0xff]   ;;  %v4504_v50 = vld [vmem:[#allocation5 + $0x150] ss:$8 sps:$4 sm:$0xff]   ;;  %v4507_v53 = vld [vmem:[#allocation5 + $0x160] ss:$8 sps:$4 sm:$0xff]  }
  0x6d   :  { %1211 = vmatpush1.bf16.msra.mxu0 %v4452_v9  ;;  %v4542_v52 = vld [vmem:[#allocation2 + $0xd8] ss:$36 sps:$4 sm:$0xff]   ;;  %v4548_v55 = vld [vmem:[#allocation2 + $0xc] ss:$36 sps:$4 sm:$0xff]   ;;  %v4513_v58 = vld [vmem:[#allocation5 + $0x180] ss:$8 sps:$4 sm:$0xff]  }
  0x6e   :  { %1212 = vmatprep.subr.bf16.mxu0 %v4453_v10  ;;  %v4512_v54 = vld [vmem:[#allocation5 + $0x174] ss:$8 sps:$4 sm:$0xff]   ;;  %v4510_v56 = vld [vmem:[#allocation5 + $0x170] ss:$8 sps:$4 sm:$0xff]   ;;  %v4515_v57 = vld [vmem:[#allocation5 + $0x184] ss:$8 sps:$4 sm:$0xff]  }
  0x6f   :  { %v4518_v59 = vld [vmem:[#allocation5 + $0x194] ss:$8 sps:$4 sm:$0xff]   ;;  %v4516_v60 = vld [vmem:[#allocation5 + $0x190] ss:$8 sps:$4 sm:$0xff]   ;;  %v4523_v61 = vld [vmem:[#allocation5 + $0x1a4] ss:$8 sps:$4 sm:$0xff]  }
  0x70   :  { %v4521_v62 = vld [vmem:[#allocation5 + $0x1a0] ss:$8 sps:$4 sm:$0xff]   ;;  %v4527_v63 = vld [vmem:[#allocation5 + $0x1b4] ss:$8 sps:$4 sm:$0xff]   ;;  %v4525_v0 = vld [vmem:[#allocation5 + $0x1b0] ss:$8 sps:$4 sm:$0xff]  }
  0x71   :  { %1213 = vmatpush1.bf16.msra.mxu0 %v4455_v11  ;;  %v4532_v1 = vld [vmem:[#allocation5 + $0x1c4] ss:$8 sps:$4 sm:$0xff]   ;;  %v4530_v2 = vld [vmem:[#allocation5 + $0x1c0] ss:$8 sps:$4 sm:$0xff]   ;;  %v4536_v3 = vld [vmem:[#allocation5 + $0x1d4] ss:$8 sps:$4 sm:$0xff]  }
  0x72   :  { %1214 = vmatprep.subr.bf16.mxu0 %v4456_v12  ;;  %v4534_v4 = vld [vmem:[#allocation5 + $0x1d0] ss:$8 sps:$4 sm:$0xff]   ;;  %v4541_v5 = vld [vmem:[#allocation5 + $0x1e4] ss:$8 sps:$4 sm:$0xff]   ;;  %v4539_v6 = vld [vmem:[#allocation5 + $0x1e0] ss:$8 sps:$4 sm:$0xff]  }
  0x73   :  { %v4545_v7 = vld [vmem:[#allocation5 + $0x1f4] ss:$8 sps:$4 sm:$0xff]   ;;  %v4543_v8 = vld [vmem:[#allocation5 + $0x1f0] ss:$8 sps:$4 sm:$0xff]   ;;  %v4551_v9 = vld [vmem:[#allocation5 + $0x204] ss:$8 sps:$4 sm:$0xff]  }
  0x74   :  { %v4546_v10 = vld [vmem:[#allocation2 + $0x8] ss:$36 sps:$4 sm:$0xff]   ;;  %v4579_v12 = vld [vmem:[#allocation2 + $0x54] ss:$36 sps:$4 sm:$0xff]  }
  0x75   :  { %1215 = vmatpush1.bf16.msra.mxu0 %v4458_v14  ;;  %v4549_v11 = vld [vmem:[#allocation5 + $0x200] ss:$8 sps:$4 sm:$0xff]   ;;  %v4554_v13 = vld [vmem:[#allocation5 + $0x214] ss:$8 sps:$4 sm:$0xff]   ;;  %v4552_v14 = vld [vmem:[#allocation5 + $0x210] ss:$8 sps:$4 sm:$0xff]  }
  0x76   :  { %1216 = vmatprep.subr.bf16.mxu0 %v4459_v15  ;;  %v4557_v15 = vld [vmem:[#allocation5 + $0x224] ss:$8 sps:$4 sm:$0xff]  }
  0x79   :  { %1217 = vmatpush1.bf16.msra.mxu0 %v4461_v16  ;;  %v4584_v16 = vld [vmem:[#allocation2 + $0x50] ss:$36 sps:$4 sm:$0xff]  }
  0x7a   :  { %1218 = vmatprep.subr.bf16.mxu0 %v4462_v17  ;;  %v4555_v17 = vld [vmem:[#allocation5 + $0x220] ss:$8 sps:$4 sm:$0xff]  }
  0x7d   :  { %1219 = vmatpush1.bf16.msra.mxu0 %v4464_v18  ;;  %v4588_v18 = vld [vmem:[#allocation2 + $0x9c] ss:$36 sps:$4 sm:$0xff]  }
  0x7e   :  { %1220 = vmatprep.subr.bf16.mxu0 %v4465_v19  ;;  %v4560_v19 = vld [vmem:[#allocation5 + $0x234] ss:$8 sps:$4 sm:$0xff]  }
  0x81   :  { %1221 = vmatpush1.bf16.msra.mxu0 %v4467_v20  ;;  %v4558_v20 = vld [vmem:[#allocation5 + $0x230] ss:$8 sps:$4 sm:$0xff]  }
  0x82   :  { %1222 = vmatprep.subr.bf16.mxu0 %v4468_v21  ;;  %v4563_v21 = vld [vmem:[#allocation5 + $0x244] ss:$8 sps:$4 sm:$0xff]  }
  0x85   :  { %1223 = vmatpush1.bf16.msra.mxu0 %v4470_v22  ;;  %v4593_v22 = vld [vmem:[#allocation2 + $0x98] ss:$36 sps:$4 sm:$0xff]  }
  0x86   :  { %1224 = vmatprep.subr.bf16.mxu0 %v4471_v23  ;;  %v4561_v23 = vld [vmem:[#allocation5 + $0x240] ss:$8 sps:$4 sm:$0xff]  }
  0x89   :  { %1225 = vmatpush1.bf16.msra.mxu0 %v4473_v24  ;;  %v4597_v24 = vld [vmem:[#allocation2 + $0xe4] ss:$36 sps:$4 sm:$0xff]  }
  0x8a   :  { %1226 = vmatprep.subr.bf16.mxu0 %v4474_v25  ;;  %v4566_v25 = vld [vmem:[#allocation5 + $0x254] ss:$8 sps:$4 sm:$0xff]  }
  0x8d   :  { %1227 = vmatpush1.bf16.msra.mxu0 %v4476_v26  ;;  %v4564_v26 = vld [vmem:[#allocation5 + $0x250] ss:$8 sps:$4 sm:$0xff]  }
  0x8e   :  { %1228 = vmatprep.subr.bf16.mxu0 %v4477_v27  ;;  %v4569_v27 = vld [vmem:[#allocation5 + $0x264] ss:$8 sps:$4 sm:$0xff]  }
  0x91   :  { %1229 = vmatpush1.bf16.msra.mxu0 %v4479_v28  ;;  %v4602_v28 = vld [vmem:[#allocation2 + $0xe0] ss:$36 sps:$4 sm:$0xff]  }
  0x92   :  { %1230 = vmatprep.subr.bf16.mxu0 %v4480_v29  ;;  %v4567_v29 = vld [vmem:[#allocation5 + $0x260] ss:$8 sps:$4 sm:$0xff]  }
  0x95   :  { %1231 = vmatpush1.bf16.msra.mxu0 %v4482_v30  ;;  %v4608_v30 = vld [vmem:[#allocation2 + $0x14] ss:$36 sps:$4 sm:$0xff]  }
  0x96   :  { %1232 = vmatprep.subr.bf16.mxu0 %v4483_v31  ;;  %v4572_v31 = vld [vmem:[#allocation5 + $0x274] ss:$8 sps:$4 sm:$0xff]  }
  0x99   :  { %1233 = vmatpush1.bf16.msra.mxu0 %v4485_v32  ;;  %v4570_v32 = vld [vmem:[#allocation5 + $0x270] ss:$8 sps:$4 sm:$0xff]  }
  0x9a   :  { %1275 = vmatprep.subr.bf16.mxu0 %v4491_v33  ;;  %v4575_v33 = vld [vmem:[#allocation5 + $0x284] ss:$8 sps:$4 sm:$0xff]  }
  0x9c   :  { %1235 = vmatmul.mubr.bf16.vlgmr.msra.gmra.mrb[0].mxu0 %v4486_v34  ;;  %v4573_v34 = vld [vmem:[#allocation5 + $0x280] ss:$8 sps:$4 sm:$0xff]  }
  0x9d   :  { %1276 = vmatpush1.bf16.msra.mxu0 %v4489_v35  ;;  %1244 = vmatprep.mubr.bf16.mxu0 %v4519_v36  ;;  %v4578_v35 = vld [vmem:[#allocation5 + $0x294] ss:$8 sps:$4 sm:$0xff]   ;;  %v4576_v36 = vld [vmem:[#allocation5 + $0x290] ss:$8 sps:$4 sm:$0xff]  }
  0x9e   :  { %1277 = vmatprep.subr.bf16.mxu0 %v4494_v37  ;;  %v4583_v37 = vld [vmem:[#allocation5 + $0x2a4] ss:$8 sps:$4 sm:$0xff]  }
  0xa1   :  { %1278 = vmatpush1.bf16.msra.mxu0 %v4492_v38  ;;  %v4581_v38 = vld [vmem:[#allocation5 + $0x2a0] ss:$8 sps:$4 sm:$0xff]  }
  0xa2   :  { %1279 = vmatprep.subr.bf16.mxu0 %v4497_v39  ;;  %v4587_v39 = vld [vmem:[#allocation5 + $0x2b4] ss:$8 sps:$4 sm:$0xff]  }
  0xa4   :  { %1245 = vmatmul.mubr.bf16.gmra.mrb[4].mxu0 %v4524_v41  ;;  %v4592_v41 = vld [vmem:[#allocation5 + $0x2c4] ss:$8 sps:$4 sm:$0xff]  }
  0xa5   :  { %1280 = vmatpush1.bf16.msra.mxu0 %v4495_v40  ;;  %1254 = vmatprep.mubr.bf16.mxu0 %v4528_v42  ;;  %v4585_v40 = vld [vmem:[#allocation5 + $0x2b0] ss:$8 sps:$4 sm:$0xff]   ;;  %v4590_v42 = vld [vmem:[#allocation5 + $0x2c0] ss:$8 sps:$4 sm:$0xff]  }
  0xa6   :  { %1281 = vmatprep.subr.bf16.mxu0 %v4500_v43  ;;  %v4596_v43 = vld [vmem:[#allocation5 + $0x2d4] ss:$8 sps:$4 sm:$0xff]  }
  0xa9   :  { %1282 = vmatpush1.bf16.msra.mxu0 %v4498_v44  ;;  %v4594_v44 = vld [vmem:[#allocation5 + $0x2d0] ss:$8 sps:$4 sm:$0xff]  }
  0xaa   :  { %1283 = vmatprep.subr.bf16.mxu0 %v4503_v45  ;;  %v4601_v45 = vld [vmem:[#allocation5 + $0x2e4] ss:$8 sps:$4 sm:$0xff]  }
  0xac   :  { %1255 = vmatmul.mubr.bf16.gmra.mrb[8].mxu0 %v4533_v46  ;;  %v4599_v46 = vld [vmem:[#allocation5 + $0x2e0] ss:$8 sps:$4 sm:$0xff]  }
  0xad   :  { %1284 = vmatpush1.bf16.msra.mxu0 %v4501_v47  ;;  %1264 = vmatprep.mubr.bf16.mxu0 %v4537_v48  ;;  %v4605_v47 = vld [vmem:[#allocation5 + $0x2f4] ss:$8 sps:$4 sm:$0xff]   ;;  %v4706_v48 = vld [vmem:[#allocation7 + $0x40] sm:$0xff]  }
  0xae   :  { %1285 = vmatprep.subr.bf16.mxu0 %v4506_v49  ;;  %v4707_v49 = vld [vmem:[#allocation7] sm:$0xff]   ;;  %4185 = vmatprep.subr.bf16.mxu1 %v4706_v48 }
  0xaf   :  { %4186 = vmatpush3.bf16.msra.mxu1 %v4707_v49  ;;  %v4689_v48 = vld [vmem:[#allocation5 + $0x444] ss:$8 sps:$4 sm:$0xff]  }
  0xb0   :  { %v4686_v49 = vld [vmem:[#allocation2 + $0xa8] ss:$36 sps:$4 sm:$0xff]  }
  0xb1   :  { %1286 = vmatpush1.bf16.msra.mxu0 %v4504_v50  ;;  %v4708_v50 = vld [vmem:[#allocation7 + $0x48] sm:$0xff]  }
  0xb2   :  { %1287 = vmatprep.subr.bf16.mxu0 %v4509_v51  ;;  %v4603_v51 = vld [vmem:[#allocation5 + $0x2f0] ss:$8 sps:$4 sm:$0xff]   ;;  %4187 = vmatprep.subr.bf16.mxu1 %v4708_v50  ;;  %v4687_v50 = vld [vmem:[#allocation5 + $0x440] ss:$8 sps:$4 sm:$0xff]  }
  0xb4   :  { %1265 = vmatmul.mubr.bf16.gmra.mrb[12].mxu0 %v4542_v52  ;;  %v4606_v52 = vld [vmem:[#allocation2 + $0x10] ss:$36 sps:$4 sm:$0xff]  }
  0xb5   :  { %1288 = vmatpush1.bf16.msra.mxu0 %v4507_v53  ;;  %1307 = vmatprep.mubr.bf16.mxu0 %v4548_v55  ;;  %v4611_v53 = vld [vmem:[#allocation5 + $0x304] ss:$8 sps:$4 sm:$0xff]   ;;  %v4639_v55 = vld [vmem:[#allocation2 + $0x5c] ss:$36 sps:$4 sm:$0xff]  }
  0xb6   :  { %1289 = vmatprep.subr.bf16.mxu0 %v4512_v54  ;;  %v4609_v54 = vld [vmem:[#allocation5 + $0x300] ss:$8 sps:$4 sm:$0xff]  }
  0xb9   :  { %1290 = vmatpush1.bf16.msra.mxu0 %v4510_v56  ;;  %v4709_v56 = vld [vmem:[#allocation7 + $0x8] sm:$0xff]  }
  0xba   :  { %1291 = vmatprep.subr.bf16.mxu0 %v4515_v57  ;;  %v4710_v57 = vld [vmem:[#allocation7 + $0x50] sm:$0xff]   ;;  %4188 = vmatpush3.bf16.msra.mxu1 %v4709_v56  ;;  %v4696_v56 = vld [vmem:[#allocation5 + $0x460] ss:$8 sps:$4 sm:$0xff]  }
  0xbb   :  { %4189 = vmatprep.subr.bf16.mxu1 %v4710_v57  ;;  %v4701_v57 = vld [vmem:[#allocation5 + $0x474] ss:$8 sps:$4 sm:$0xff]  }
  0xbd   :  { %1292 = vmatpush1.bf16.msra.mxu0 %v4513_v58  ;;  %v4614_v58 = vld [vmem:[#allocation5 + $0x314] ss:$8 sps:$4 sm:$0xff]  }
  0xbe   :  { %1293 = vmatprep.subr.bf16.mxu0 %v4518_v59  ;;  %v4711_v59 = vld [vmem:[#allocation7 + $0x10] sm:$0xff]  }
  0xbf   :  { %4190 = vmatpush3.bf16.msra.mxu1 %v4711_v59  ;;  %v5089_v59 = vmov 0  }
  0xc1   :  { %1294 = vmatpush1.bf16.msra.mxu0 %v4516_v60  ;;  %v4712_v60 = vld [vmem:[#allocation7 + $0x58] sm:$0xff]  }
  0xc2   :  { %1295 = vmatprep.subr.bf16.mxu0 %v4523_v61  ;;  %v4612_v61 = vld [vmem:[#allocation5 + $0x310] ss:$8 sps:$4 sm:$0xff]   ;;  %4191 = vmatprep.subr.bf16.mxu1 %v4712_v60  ;;  %v4702_v60 = vld [vmem:[#allocation2 + $0x20] ss:$36 sps:$4 sm:$0xff]  }
  0xc5   :  { %1296 = vmatpush1.bf16.msra.mxu0 %v4521_v62  ;;  %v4617_v62 = vld [vmem:[#allocation5 + $0x324] ss:$8 sps:$4 sm:$0xff]  }
  0xc6   :  { %1297 = vmatprep.subr.bf16.mxu0 %v4527_v63  ;;  %v4713_v63 = vld [vmem:[#allocation7 + $0x18] sm:$0xff]  }
  0xc7   :  { %4192 = vmatpush3.bf16.msra.mxu1 %v4713_v63  ;;  %v4705_v63 = vld [vmem:[#allocation2 + $0xf8] ss:$36 sps:$4 sm:$0xff]  }
  0xc9   :  { %1298 = vmatpush1.bf16.msra.mxu0 %v4525_v0  ;;  %v4641_v0 = vld [vmem:[#allocation2 + $0x58] ss:$36 sps:$4 sm:$0xff]  }
  0xca   :  { %1299 = vmatprep.subr.bf16.mxu0 %v4532_v1  ;;  %v4714_v1 = vld [vmem:[#allocation7 + $0x60] sm:$0xff]  }
  0xcb   :  { %4193 = vmatprep.subr.bf16.mxu1 %v4714_v1  ;;  %v4718_v1 = vld [vmem:[#allocation7 + $0x70] sm:$0xff]  }
  0xcd   :  { %1300 = vmatpush1.bf16.msra.mxu0 %v4530_v2  ;;  %v4615_v2 = vld [vmem:[#allocation5 + $0x320] ss:$8 sps:$4 sm:$0xff]  }
  0xce   :  { %1301 = vmatprep.subr.bf16.mxu0 %v4536_v3  ;;  %v4648_v3 = vld [vmem:[#allocation2 + $0xa4] ss:$36 sps:$4 sm:$0xff]  }
  0xd1   :  { %1302 = vmatpush1.bf16.msra.mxu0 %v4534_v4  ;;  %v4620_v4 = vld [vmem:[#allocation5 + $0x334] ss:$8 sps:$4 sm:$0xff]  }
  0xd2   :  { %1303 = vmatprep.subr.bf16.mxu0 %v4541_v5  ;;  %v4715_v5 = vld [vmem:[#allocation7 + $0x20] sm:$0xff]  }
  0xd3   :  { %4194 = vmatpush3.bf16.msra.mxu1 %v4715_v5  ;;  %v4724_v5 = vld [vmem:[#allocation8 + $0x4] ss:$8 sps:$4 sm:$0xff]  }
  0xd5   :  { %1304 = vmatpush1.bf16.msra.mxu0 %v4539_v6  ;;  %v4716_v6 = vld [vmem:[#allocation7 + $0x68] sm:$0xff]  }
  0xd6   :  { %1305 = vmatprep.subr.bf16.mxu0 %v4545_v7  ;;  %v4618_v7 = vld [vmem:[#allocation5 + $0x330] ss:$8 sps:$4 sm:$0xff]   ;;  %4195 = vmatprep.subr.bf16.mxu1 %v4716_v6  ;;  %v288_v6 = vlaneseq }
  0xd9   :  { %1306 = vmatpush1.bf16.msra.mxu0 %v4543_v8  ;;  %v4623_v8 = vld [vmem:[#allocation5 + $0x344] ss:$8 sps:$4 sm:$0xff]  }
  0xda   :  { %1348 = vmatprep.subr.bf16.mxu0 %v4551_v9  ;;  %v4650_v9 = vld [vmem:[#allocation2 + $0xa0] ss:$36 sps:$4 sm:$0xff]  }
  0xdc   :  { %1308 = vmatmul.mubr.bf16.vlgmr.msra.gmra.mrb[0].mxu0 %v4546_v10  ;;  %v4621_v10 = vld [vmem:[#allocation5 + $0x340] ss:$8 sps:$4 sm:$0xff]  }
  0xdd   :  { %1349 = vmatpush1.bf16.msra.mxu0 %v4549_v11  ;;  %1317 = vmatprep.mubr.bf16.mxu0 %v4579_v12  ;;  %v4657_v11 = vld [vmem:[#allocation2 + $0xec] ss:$36 sps:$4 sm:$0xff]   ;;  %v4626_v12 = vld [vmem:[#allocation5 + $0x354] ss:$8 sps:$4 sm:$0xff]  }
  0xde   :  { %1350 = vmatprep.subr.bf16.mxu0 %v4554_v13  ;;  %v4624_v13 = vld [vmem:[#allocation5 + $0x350] ss:$8 sps:$4 sm:$0xff]  }
  0xe1   :  { %1351 = vmatpush1.bf16.msra.mxu0 %v4552_v14  ;;  %v4629_v14 = vld [vmem:[#allocation5 + $0x364] ss:$8 sps:$4 sm:$0xff]  }
  0xe2   :  { %1352 = vmatprep.subr.bf16.mxu0 %v4557_v15  ;;  %v4659_v15 = vld [vmem:[#allocation2 + $0xe8] ss:$36 sps:$4 sm:$0xff]  }
  0xe4   :  { %1318 = vmatmul.mubr.bf16.gmra.mrb[4].mxu0 %v4584_v16  ;;  %v4627_v16 = vld [vmem:[#allocation5 + $0x360] ss:$8 sps:$4 sm:$0xff]  }
  0xe5   :  { %1353 = vmatpush1.bf16.msra.mxu0 %v4555_v17  ;;  %1327 = vmatprep.mubr.bf16.mxu0 %v4588_v18  ;;  %v4668_v17 = vld [vmem:[#allocation2 + $0x1c] ss:$36 sps:$4 sm:$0xff]  }
  0xe6   :  { %1354 = vmatprep.subr.bf16.mxu0 %v4560_v19  ;;  %v4632_v18 = vld [vmem:[#allocation5 + $0x374] ss:$8 sps:$4 sm:$0xff]   ;;  %v4630_v19 = vld [vmem:[#allocation5 + $0x370] ss:$8 sps:$4 sm:$0xff]  }
  0xe9   :  { %1355 = vmatpush1.bf16.msra.mxu0 %v4558_v20  ;;  %v4635_v20 = vld [vmem:[#allocation5 + $0x384] ss:$8 sps:$4 sm:$0xff]  }
  0xea   :  { %1356 = vmatprep.subr.bf16.mxu0 %v4563_v21  ;;  %v4633_v21 = vld [vmem:[#allocation5 + $0x380] ss:$8 sps:$4 sm:$0xff]  }
  0xec   :  { %1328 = vmatmul.mubr.bf16.gmra.mrb[8].mxu0 %v4593_v22  ;;  %v4638_v22 = vld [vmem:[#allocation5 + $0x394] ss:$8 sps:$4 sm:$0xff]  }
  0xed   :  { %1357 = vmatpush1.bf16.msra.mxu0 %v4561_v23  ;;  %1337 = vmatprep.mubr.bf16.mxu0 %v4597_v24  ;;  %v4636_v23 = vld [vmem:[#allocation5 + $0x390] ss:$8 sps:$4 sm:$0xff]   ;;  %v4644_v24 = vld [vmem:[#allocation5 + $0x3a4] ss:$8 sps:$4 sm:$0xff]  }
  0xee   :  { %1358 = vmatprep.subr.bf16.mxu0 %v4566_v25  ;;  %v4642_v25 = vld [vmem:[#allocation5 + $0x3a0] ss:$8 sps:$4 sm:$0xff]  }
  0xf1   :  { %1359 = vmatpush1.bf16.msra.mxu0 %v4564_v26  ;;  %v4647_v26 = vld [vmem:[#allocation5 + $0x3b4] ss:$8 sps:$4 sm:$0xff]  }
  0xf2   :  { %1360 = vmatprep.subr.bf16.mxu0 %v4569_v27  ;;  %v4645_v27 = vld [vmem:[#allocation5 + $0x3b0] ss:$8 sps:$4 sm:$0xff]  }
  0xf4   :  { %1338 = vmatmul.mubr.bf16.gmra.mrb[12].mxu0 %v4602_v28  ;;  %v4653_v28 = vld [vmem:[#allocation5 + $0x3c4] ss:$8 sps:$4 sm:$0xff]  }
  0xf5   :  { %1361 = vmatpush1.bf16.msra.mxu0 %v4567_v29  ;;  %1380 = vmatprep.mubr.bf16.mxu0 %v4608_v30  ;;  %v4651_v29 = vld [vmem:[#allocation5 + $0x3c0] ss:$8 sps:$4 sm:$0xff]   ;;  %v4656_v30 = vld [vmem:[#allocation5 + $0x3d4] ss:$8 sps:$4 sm:$0xff]  }
  0xf6   :  { %1362 = vmatprep.subr.bf16.mxu0 %v4572_v31  ;;  %v4654_v31 = vld [vmem:[#allocation5 + $0x3d0] ss:$8 sps:$4 sm:$0xff]  }
  0xf9   :  { %1363 = vmatpush1.bf16.msra.mxu0 %v4570_v32  ;;  %v4662_v32 = vld [vmem:[#allocation5 + $0x3e4] ss:$8 sps:$4 sm:$0xff]  }
  0xfa   :  { %1364 = vmatprep.subr.bf16.mxu0 %v4575_v33  ;;  %v4660_v33 = vld [vmem:[#allocation5 + $0x3e0] ss:$8 sps:$4 sm:$0xff]  }
  0xfd   :  { %1365 = vmatpush1.bf16.msra.mxu0 %v4573_v34  ;;  %v4665_v34 = vld [vmem:[#allocation5 + $0x3f4] ss:$8 sps:$4 sm:$0xff]  }
  0xfe   :  { %1366 = vmatprep.subr.bf16.mxu0 %v4578_v35  ;;  %v4663_v35 = vld [vmem:[#allocation5 + $0x3f0] ss:$8 sps:$4 sm:$0xff]  }
 0x101   :  { %1367 = vmatpush1.bf16.msra.mxu0 %v4576_v36  ;;  %v4671_v36 = vld [vmem:[#allocation5 + $0x404] ss:$8 sps:$4 sm:$0xff]  }
 0x102   :  { %1368 = vmatprep.subr.bf16.mxu0 %v4583_v37  ;;  %v4666_v37 = vld [vmem:[#allocation2 + $0x18] ss:$36 sps:$4 sm:$0xff]  }
 0x105   :  { %1369 = vmatpush1.bf16.msra.mxu0 %v4581_v38  ;;  %v4669_v38 = vld [vmem:[#allocation5 + $0x400] ss:$8 sps:$4 sm:$0xff]  }
 0x106   :  { %1370 = vmatprep.subr.bf16.mxu0 %v4587_v39  ;;  %v4675_v39 = vld [vmem:[#allocation2 + $0x64] ss:$36 sps:$4 sm:$0xff]  }
 0x109   :  { %1371 = vmatpush1.bf16.msra.mxu0 %v4585_v40  ;;  %v4674_v40 = vld [vmem:[#allocation5 + $0x414] ss:$8 sps:$4 sm:$0xff]  }
 0x10a   :  { %1372 = vmatprep.subr.bf16.mxu0 %v4592_v41  ;;  %v4672_v41 = vld [vmem:[#allocation5 + $0x410] ss:$8 sps:$4 sm:$0xff]  }
 0x10d   :  { %1373 = vmatpush1.bf16.msra.mxu0 %v4590_v42  ;;  %v4680_v42 = vld [vmem:[#allocation5 + $0x424] ss:$8 sps:$4 sm:$0xff]  }
 0x10e   :  { %1374 = vmatprep.subr.bf16.mxu0 %v4596_v43  ;;  %v4677_v43 = vld [vmem:[#allocation2 + $0x60] ss:$36 sps:$4 sm:$0xff]  }
 0x111   :  { %1375 = vmatpush1.bf16.msra.mxu0 %v4594_v44  ;;  %v4678_v44 = vld [vmem:[#allocation5 + $0x420] ss:$8 sps:$4 sm:$0xff]  }
 0x112   :  { %1376 = vmatprep.subr.bf16.mxu0 %v4601_v45  ;;  %v4684_v45 = vld [vmem:[#allocation2 + $0xac] ss:$36 sps:$4 sm:$0xff]  }
 0x115   :  { %1377 = vmatpush1.bf16.msra.mxu0 %v4599_v46  ;;  %v4683_v46 = vld [vmem:[#allocation5 + $0x434] ss:$8 sps:$4 sm:$0xff]  }
 0x116   :  { %1378 = vmatprep.subr.bf16.mxu0 %v4605_v47  ;;  %v4681_v47 = vld [vmem:[#allocation5 + $0x430] ss:$8 sps:$4 sm:$0xff]  }
 0x119   :  { %1379 = vmatpush1.bf16.msra.mxu0 %v4603_v51  ;;  %v4693_v51 = vld [vmem:[#allocation2 + $0xf4] ss:$36 sps:$4 sm:$0xff]  }
 0x11a   :  { %1421 = vmatprep.subr.bf16.mxu0 %v4611_v53  ;;  %v4690_v53 = vld [vmem:[#allocation5 + $0x450] ss:$8 sps:$4 sm:$0xff]  }
 0x11c   :  { %1381 = vmatmul.mubr.bf16.vlgmr.msra.gmra.mrb[0].mxu0 %v4606_v52  ;;  %v4692_v52 = vld [vmem:[#allocation5 + $0x454] ss:$8 sps:$4 sm:$0xff]  }
 0x11d   :  { %1422 = vmatpush1.bf16.msra.mxu0 %v4609_v54  ;;  %1390 = vmatprep.mubr.bf16.mxu0 %v4639_v55  ;;  %v4698_v54 = vld [vmem:[#allocation5 + $0x464] ss:$8 sps:$4 sm:$0xff]   ;;  %v4695_v55 = vld [vmem:[#allocation2 + $0xf0] ss:$36 sps:$4 sm:$0xff]  }
 0x11e   :  { %1423 = vmatprep.subr.bf16.mxu0 %v4614_v58  ;;  %v4699_v58 = vld [vmem:[#allocation5 + $0x470] ss:$8 sps:$4 sm:$0xff]  }
 0x121   :  { %1424 = vmatpush1.bf16.msra.mxu0 %v4612_v61  ;;  %v4703_v61 = vld [vmem:[#allocation2 + $0x68] ss:$36 sps:$4 sm:$0xff]  }
 0x122   :  { %1425 = vmatprep.subr.bf16.mxu0 %v4617_v62  ;;  %v4704_v62 = vld [vmem:[#allocation2 + $0xb0] ss:$36 sps:$4 sm:$0xff]  }
 0x124   :  { %1391 = vmatmul.mubr.bf16.gmra.mrb[4].mxu0 %v4641_v0  ;;  %v4717_v0 = vld [vmem:[#allocation7 + $0x28] sm:$0xff]  }
 0x125   :  { %1426 = vmatpush1.bf16.msra.mxu0 %v4615_v2  ;;  %1400 = vmatprep.mubr.bf16.mxu0 %v4648_v3  ;;  %v4719_v2 = vld [vmem:[#allocation7 + $0x30] sm:$0xff]   ;;  %v4720_v3 = vld [vmem:[#allocation7 + $0x78] sm:$0xff]  }
 0x126   :  { %1427 = vmatprep.subr.bf16.mxu0 %v4620_v4  ;;  %4196 = vmatpush3.bf16.msra.mxu1 %v4717_v0  ;;  %v4721_v4 = vld [vmem:[#allocation7 + $0x38] sm:$0xff]  }
 0x127   :  { %4197 = vmatprep.subr.bf16.mxu1 %v4718_v1  ;;  %v4734_v1 = vld [vmem:[#allocation8 + $0x40] ss:$8 sps:$4 sm:$0xff]  }
 0x129   :  { %1428 = vmatpush1.bf16.msra.mxu0 %v4618_v7  ;;  %v5211_v7 = vshrl.u32 %v288_v6, 7 }
 0x12a   :  { %1429 = vmatprep.subr.bf16.mxu0 %v4623_v8  ;;  %4198 = vmatpush3.bf16.msra.mxu1 %v4719_v2 }
 0x12b   :  { %4199 = vmatprep.subr.bf16.mxu1 %v4720_v3  ;;  %v5214_v8 = vsub.s32 0, %v5211_v7 }
 0x12c   :  { %1401 = vmatmul.mubr.bf16.gmra.mrb[8].mxu0 %v4650_v9  ;;  %v286_v9 = vld [vmem:[%s5418_s2] sm:$0x3] }
 0x12d   :  { %1430 = vmatpush1.bf16.msra.mxu0 %v4621_v10  ;;  %1410 = vmatprep.mubr.bf16.mxu0 %v4657_v11  ;;  %v5220_v10 = vsub.s32 1, %v5211_v7  ;;  %v5223_v11 = vrot.slane %v286_v9, %v5214_v8 }
 0x12e   :  { %1431 = vmatprep.subr.bf16.mxu0 %v4626_v12  ;;  %4200 = vmatpush3.bf16.msra.mxu1 %v4721_v4  ;;  %v4739_v4 = vld [vmem:[#allocation8 + $0x54] ss:$8 sps:$4 sm:$0xff]  }
 0x12f   :  { %1903 = vmatprep.subr.bf16.mxu1 %v4724_v5  ;;  %v5226_v12 = vrot.slane %v286_v9, %v5220_v10 }
 0x131   :  { %1432 = vmatpush1.bf16.msra.mxu0 %v4624_v13 }
 0x132   :  { %1433 = vmatprep.subr.bf16.mxu0 %v4629_v14 }
 0x134   :  { %1411 = vmatmul.mubr.bf16.gmra.mrb[12].mxu0 %v4659_v15 }
 0x135   :  { %1434 = vmatpush1.bf16.msra.mxu0 %v4627_v16  ;;  %1453 = vmatprep.mubr.bf16.mxu0 %v4668_v17 }
 0x136   :  { %1435 = vmatprep.subr.bf16.mxu0 %v4632_v18 }
 0x139   :  { %1436 = vmatpush1.bf16.msra.mxu0 %v4630_v19 }
 0x13a   :  { %1437 = vmatprep.subr.bf16.mxu0 %v4635_v20 }
 0x13d   :  { %1438 = vmatpush1.bf16.msra.mxu0 %v4633_v21 }
 0x13e   :  { %1439 = vmatprep.subr.bf16.mxu0 %v4638_v22 }
 0x141   :  { %1440 = vmatpush1.bf16.msra.mxu0 %v4636_v23 }
 0x142   :  { %1441 = vmatprep.subr.bf16.mxu0 %v4644_v24 }
 0x145   :  { %1442 = vmatpush1.bf16.msra.mxu0 %v4642_v25 }
 0x146   :  { %1443 = vmatprep.subr.bf16.mxu0 %v4647_v26 }
 0x149   :  { %1444 = vmatpush1.bf16.msra.mxu0 %v4645_v27 }
 0x14a   :  { %1445 = vmatprep.subr.bf16.mxu0 %v4653_v28  ;;  %v4722_v28 = vld [vmem:[#allocation8] ss:$8 sps:$4 sm:$0xff]  }
 0x14d   :  { %1446 = vmatpush1.bf16.msra.mxu0 %v4651_v29 }
 0x14e   :  { %1447 = vmatprep.subr.bf16.mxu0 %v4656_v30 }
 0x151   :  { %1448 = vmatpush1.bf16.msra.mxu0 %v4654_v31  ;;  %v4727_v31 = vld [vmem:[#allocation8 + $0x14] ss:$8 sps:$4 sm:$0xff]  }
 0x152   :  { %1449 = vmatprep.subr.bf16.mxu0 %v4662_v32 }
 0x155   :  { %1450 = vmatpush1.bf16.msra.mxu0 %v4660_v33 }
 0x156   :  { %1451 = vmatprep.subr.bf16.mxu0 %v4665_v34 }
 0x159   :  { %1452 = vmatpush1.bf16.msra.mxu0 %v4663_v35 }
 0x15a   :  { %1494 = vmatprep.subr.bf16.mxu0 %v4671_v36 }
 0x15c   :  { %1454 = vmatmul.mubr.bf16.vlgmr.msra.gmra.mrb[0].mxu0 %v4666_v37  ;;  %v4725_v37 = vld [vmem:[#allocation8 + $0x10] ss:$8 sps:$4 sm:$0xff]  }
 0x15d   :  { %1495 = vmatpush1.bf16.msra.mxu0 %v4669_v38  ;;  %1463 = vmatprep.mubr.bf16.mxu0 %v4675_v39 }
 0x15e   :  { %1496 = vmatprep.subr.bf16.mxu0 %v4674_v40  ;;  %v4730_v40 = vld [vmem:[#allocation8 + $0x24] ss:$8 sps:$4 sm:$0xff]  }
 0x161   :  { %1497 = vmatpush1.bf16.msra.mxu0 %v4672_v41 }
 0x162   :  { %1498 = vmatprep.subr.bf16.mxu0 %v4680_v42 }
 0x164   :  { %1464 = vmatmul.mubr.bf16.gmra.mrb[4].mxu0 %v4677_v43 }
 0x165   :  { %1499 = vmatpush1.bf16.msra.mxu0 %v4678_v44  ;;  %1473 = vmatprep.mubr.bf16.mxu0 %v4684_v45 }
 0x166   :  { %1500 = vmatprep.subr.bf16.mxu0 %v4683_v46  ;;  %v4728_v46 = vld [vmem:[#allocation8 + $0x20] ss:$8 sps:$4 sm:$0xff]  }
 0x169   :  { %1501 = vmatpush1.bf16.msra.mxu0 %v4681_v47 }
 0x16a   :  { %1502 = vmatprep.subr.bf16.mxu0 %v4689_v48 }
 0x16c   :  { %1474 = vmatmul.mubr.bf16.gmra.mrb[8].mxu0 %v4686_v49  ;;  %v4733_v49 = vld [vmem:[#allocation8 + $0x34] ss:$8 sps:$4 sm:$0xff]  }
 0x16d   :  { %1503 = vmatpush1.bf16.msra.mxu0 %v4687_v50  ;;  %1483 = vmatprep.mubr.bf16.mxu0 %v4693_v51 }
 0x16e   :  { %1504 = vmatprep.subr.bf16.mxu0 %v4692_v52 }
 0x171   :  { %1505 = vmatpush1.bf16.msra.mxu0 %v4690_v53 }
 0x172   :  { %1506 = vmatprep.subr.bf16.mxu0 %v4698_v54 }
 0x174   :  { %1484 = vmatmul.mubr.bf16.gmra.mrb[12].mxu0 %v4695_v55  ;;  %v4731_v55 = vld [vmem:[#allocation8 + $0x30] ss:$8 sps:$4 sm:$0xff]  }
 0x175   :  { %1507 = vmatpush1.bf16.msra.mxu0 %v4696_v56  ;;  %1526 = vmatprep.mubr.bf16.mxu0 %v5089_v59 }
 0x176   :  { %1508 = vmatprep.subr.bf16.mxu0 %v4701_v57 }
 0x179   :  { %1509 = vmatpush1.bf16.msra.mxu0 %v4699_v58  ;;  %v4736_v58 = vld [vmem:[#allocation8 + $0x44] ss:$8 sps:$4 sm:$0xff]  }
 0x17c   :  { %1527 = vmatmul.mubr.bf16.vlgmr.msra.gmra.mrb[0].mxu0 %v4702_v60 }
 0x17d   :  { %1536 = vmatprep.mubr.bf16.mxu0 %v5089_v59 }
 0x184   :  { %1537 = vmatmul.mubr.bf16.gmra.mrb[4].mxu0 %v4703_v61 }
 0x185   :  { %1546 = vmatprep.mubr.bf16.mxu0 %v5089_v59 }
 0x18c   :  { %1547 = vmatmul.mubr.bf16.gmra.mrb[8].mxu0 %v4704_v62 }
 0x18d   :  { %1556 = vmatprep.mubr.bf16.mxu0 %v5089_v59 }
 0x194   :  { %1557 = vmatmul.mubr.bf16.gmra.mrb[12].mxu0 %v4705_v63 }
 0x24f   :  { %v1528_v13 = vpop.f32.mrb[0].mxu0 }
 0x250   :  { %v4345_v14 = vadd.f32 %v1528_v13, %v5223_v11  ;;  %v1530_v15 = vpop.f32.mrb[1].mxu0 }
 0x251   :  { %v4346_v16 = vadd.f32 %v1530_v15, %v5226_v12  ;;  %v1532_v17 = vpop.f32.mrb[2].mxu0  ;;  %v4737_v15 = vld [vmem:[#allocation8 + $0x50] ss:$8 sps:$4 sm:$0xff]  }
 0x252   :  { %v4347_v18 = vadd.f32 %v1532_v17, %v5223_v11  ;;  %v1534_v19 = vpop.f32.mrb[3].mxu0  ;;  %v1567_v21 = vmax.f32 %v4345_v14, 0.0 }
 0x253   :  { %v4348_v20 = vadd.f32 %v1534_v19, %v5226_v12  ;;  %v1568_v23 = vmax.f32 %v4346_v16, 0.0 }
 0x254   :  { %v1569_v22 = vmax.f32 %v4347_v18, 0.0 }
 0x255   :  { %v1570_v24 = vmax.f32 %v4348_v20, 0.0 }
 0x256   :  { %v1583_v25 = vpack.c.bf16 %v1569_v22, %v1567_v21  ;;  %v4742_v22 = vld [vmem:[#allocation8 + $0x64] ss:$8 sps:$4 sm:$0xff]  }
 0x257   :  { %v1538_v26 = vpop.f32.mrb[4].mxu0  ;;  %v1584_v27 = vpack.c.bf16 %v1570_v24, %v1568_v23  ;;  %v4745_v23 = vld [vmem:[#allocation8 + $0x74] ss:$8 sps:$4 sm:$0xff]   ;;  %v4748_v24 = vld [vmem:[#allocation10 + $0x4] ss:$36 sps:$4 sm:$0xff]  }
 0x258   :  { %v4349_v29 = vadd.f32 %v1538_v26, %v5223_v11  ;;  %v1540_v30 = vpop.f32.mrb[5].mxu0  ;;  %v4774_v26 = vld [vmem:[#allocation10 + $0x20] ss:$36 sps:$4 sm:$0xff]  }
 0x259   :  { %v4350_v32 = vadd.f32 %v1540_v30, %v5226_v12  ;;  %v1542_v33 = vpop.f32.mrb[6].mxu0  ;;  %1758 = vmatprep.mubr.bf16.mxu1 %v1584_v27  ;;  %v4778_v27 = vld [vmem:[#allocation10 + $0x2a8] ss:$36 sps:$4 sm:$0xff]   ;;  %v4784_v30 = vld [vmem:[#allocation10 + $0xb0] ss:$36 sps:$4 sm:$0xff]  }
 0x25a   :  { %v4351_v34 = vadd.f32 %v1542_v33, %v5223_v11  ;;  %v1544_v35 = vpop.f32.mrb[7].mxu0  ;;  %1759 = vmatmul.mubr.bf16.vlgmr.msra.gmra.mrb[0].mxu1 %v1583_v25  ;;  %v1571_v38 = vmax.f32 %v4349_v29, 0.0  ;;  %v4773_v25 = vld [vmem:[#allocation10 + $0x260] ss:$36 sps:$4 sm:$0xff]   ;;  %v4783_v29 = vld [vmem:[#allocation10 + $0x2f0] ss:$36 sps:$4 sm:$0xff]  }
 0x25b   :  { %v4352_v36 = vadd.f32 %v1544_v35, %v5226_v12  ;;  %1904 = vmatpush1.bf16.msra.mxu1 %v4722_v28  ;;  %v1572_v41 = vmax.f32 %v4350_v32, 0.0  ;;  %4305 = vmatprep.subr.bf16.mxu0 %v4773_v25  ;;  %v4779_v28 = vld [vmem:[#allocation10 + $0x68] ss:$36 sps:$4 sm:$0xff]   ;;  %v4789_v32 = vld [vmem:[#allocation10 + $0xf8] ss:$36 sps:$4 sm:$0xff]  }
 0x25c   :  { %v1573_v39 = vmax.f32 %v4351_v34, 0.0  ;;  %1905 = vmatprep.subr.bf16.mxu1 %v4727_v31  ;;  %4306 = vmatpush3.bf16.msra.mxu0 %v4774_v26  ;;  %v4788_v31 = vld [vmem:[#allocation10 + $0x338] ss:$36 sps:$4 sm:$0xff]   ;;  %v4793_v33 = vld [vmem:[#allocation10 + $0x380] ss:$36 sps:$4 sm:$0xff]  }
 0x25d   :  { %v1574_v42 = vmax.f32 %v4352_v36, 0.0  ;;  %4307 = vmatprep.subr.bf16.mxu0 %v4778_v27  ;;  %v4794_v34 = vld [vmem:[#allocation10 + $0x140] ss:$36 sps:$4 sm:$0xff]   ;;  %v4798_v35 = vld [vmem:[#allocation10 + $0x3c8] ss:$36 sps:$4 sm:$0xff]  }
 0x25e   :  { %v1585_v43 = vpack.c.bf16 %v1573_v39, %v1571_v38  ;;  %v4769_v26 = vld [vmem:[#allocation10 + $0x1fc] ss:$36 sps:$4 sm:$0xff]  }
 0x25f   :  { %v1586_v44 = vpack.c.bf16 %v1574_v42, %v1572_v41  ;;  %v1548_v45 = vpop.f32.mrb[8].mxu0  ;;  %1906 = vmatpush1.bf16.msra.mxu1 %v4725_v37  ;;  %v4767_v27 = vld [vmem:[#allocation10 + $0x1f8] ss:$36 sps:$4 sm:$0xff]  }
 0x260   :  { %v4353_v47 = vadd.f32 %v1548_v45, %v5223_v11  ;;  %v1550_v48 = vpop.f32.mrb[9].mxu0  ;;  %1907 = vmatprep.subr.bf16.mxu1 %v4730_v40  ;;  %4308 = vmatpush3.bf16.msra.mxu0 %v4779_v28  ;;  %v3912_v40 = vld [vmem:[%s5420_s4] ss:$0 sm:$0xff]  ;;  %v4772_v28 = vld [vmem:[#allocation10 + $0x244] ss:$36 sps:$4 sm:$0xff]  }
 0x261   :  { %v4354_v50 = vadd.f32 %v1550_v48, %v5226_v12  ;;  %v1552_v51 = vpop.f32.mrb[10].mxu0  ;;  %1766 = vmatprep.mubr.bf16.mxu1 %v1586_v44  ;;  %4309 = vmatprep.subr.bf16.mxu0 %v4783_v29  ;;  %v4746_v45 = vld [vmem:[#allocation10] ss:$36 sps:$4 sm:$0xff]   ;;  %v4751_v48 = vld [vmem:[#allocation10 + $0x4c] ss:$36 sps:$4 sm:$0xff]  }
 0x262   :  { %v4355_v52 = vadd.f32 %v1552_v51, %v5223_v11  ;;  %v1554_v53 = vpop.f32.mrb[11].mxu0  ;;  %1767 = vmatmul.mubr.bf16.gmra.mrb[4].mxu1 %v1585_v43  ;;  %v1575_v56 = vmax.f32 %v4353_v47, 0.0  ;;  %v4770_v29 = vld [vmem:[#allocation10 + $0x240] ss:$36 sps:$4 sm:$0xff]  }
 0x263   :  { %v4356_v54 = vadd.f32 %v1554_v53, %v5226_v12  ;;  %1908 = vmatpush1.bf16.msra.mxu1 %v4728_v46  ;;  %v1576_v60 = vmax.f32 %v4354_v50, 0.0  ;;  %v4749_v53 = vld [vmem:[#allocation10 + $0x48] ss:$36 sps:$4 sm:$0xff]  }
 0x264   :  { %v1577_v57 = vmax.f32 %v4355_v52, 0.0  ;;  %1909 = vmatprep.subr.bf16.mxu1 %v4733_v49  ;;  %4310 = vmatpush3.bf16.msra.mxu0 %v4784_v30  ;;  %v4775_v30 = vld [vmem:[#allocation10 + $0x288] ss:$36 sps:$4 sm:$0xff]  }
 0x265   :  { %v1578_v61 = vmax.f32 %v4356_v54, 0.0  ;;  %4311 = vmatprep.subr.bf16.mxu0 %v4788_v31  ;;  %v4782_v31 = vld [vmem:[#allocation10 + $0x2d4] ss:$36 sps:$4 sm:$0xff]  }
 0x266   :  { %v1587_v62 = vpack.c.bf16 %v1577_v57, %v1575_v56 }
 0x267   :  { %v1588_v63 = vpack.c.bf16 %v1578_v61, %v1576_v60  ;;  %v1558_v0 = vpop.f32.mrb[12].mxu0  ;;  %1910 = vmatpush1.bf16.msra.mxu1 %v4731_v55  ;;  %v4754_v55 = vld [vmem:[#allocation10 + $0x94] ss:$36 sps:$4 sm:$0xff]  }
 0x268   :  { %v4357_v2 = vadd.f32 %v1558_v0, %v5223_v11  ;;  %v1560_v3 = vpop.f32.mrb[13].mxu0  ;;  %1911 = vmatprep.subr.bf16.mxu1 %v4736_v58  ;;  %4312 = vmatpush3.bf16.msra.mxu0 %v4789_v32  ;;  %v4752_v58 = vld [vmem:[#allocation10 + $0x90] ss:$36 sps:$4 sm:$0xff]  }
 0x269   :  { %v4358_v5 = vadd.f32 %v1560_v3, %v5226_v12  ;;  %v1562_v6 = vpop.f32.mrb[14].mxu0  ;;  %1774 = vmatprep.mubr.bf16.mxu1 %v1588_v63  ;;  %4313 = vmatprep.subr.bf16.mxu0 %v4793_v33  ;;  %v4755_v3 = vld [vmem:[#allocation10 + $0xd8] ss:$36 sps:$4 sm:$0xff]   ;;  %v4780_v32 = vld [vmem:[#allocation10 + $0x2d0] ss:$36 sps:$4 sm:$0xff]  }
 0x26a   :  { %v4359_v9 = vadd.f32 %v1562_v6, %v5223_v11  ;;  %v1564_v13 = vpop.f32.mrb[15].mxu0  ;;  %1775 = vmatmul.mubr.bf16.gmra.mrb[8].mxu1 %v1587_v62  ;;  %v1579_v16 = vmax.f32 %v4357_v2, 0.0  ;;  %v4740_v11 = vld [vmem:[#allocation8 + $0x60] ss:$8 sps:$4 sm:$0xff]  }
 0x26b   :  { %v4360_v14 = vadd.f32 %v1564_v13, %v5226_v12  ;;  %1912 = vmatpush1.bf16.msra.mxu1 %v4734_v1  ;;  %v1580_v18 = vmax.f32 %v4358_v5, 0.0  ;;  %v4743_v12 = vld [vmem:[#allocation8 + $0x70] ss:$8 sps:$4 sm:$0xff]   ;;  %v4757_v62 = vld [vmem:[#allocation10 + $0xdc] ss:$36 sps:$4 sm:$0xff]  }
 0x26c   :  { %v1581_v17 = vmax.f32 %v4359_v9, 0.0  ;;  %1913 = vmatprep.subr.bf16.mxu1 %v4739_v4  ;;  %4314 = vmatpush3.bf16.msra.mxu0 %v4794_v34  ;;  %v4760_v5 = vld [vmem:[#allocation10 + $0x124] ss:$36 sps:$4 sm:$0xff]   ;;  %v4787_v33 = vld [vmem:[#allocation10 + $0x31c] ss:$36 sps:$4 sm:$0xff]  }
 0x26d   :  { %v1582_v19 = vmax.f32 %v4360_v14, 0.0  ;;  %4315 = vmatprep.subr.bf16.mxu0 %v4798_v35  ;;  %v4758_v13 = vld [vmem:[#allocation10 + $0x120] ss:$36 sps:$4 sm:$0xff]   ;;  %v4785_v34 = vld [vmem:[#allocation10 + $0x318] ss:$36 sps:$4 sm:$0xff]  }
 0x26e   :  { %v1589_v20 = vpack.c.bf16 %v1581_v17, %v1579_v16  ;;  %v4763_v16 = vld [vmem:[#allocation10 + $0x16c] ss:$36 sps:$4 sm:$0xff]   ;;  %v4792_v35 = vld [vmem:[#allocation10 + $0x364] ss:$36 sps:$4 sm:$0xff]  }
 0x26f   :  { %v1590_v21 = vpack.c.bf16 %v1582_v19, %v1580_v18  ;;  %1914 = vmatpush1.bf16.msra.mxu1 %v4737_v15 }
 0x270   :  { %1915 = vmatprep.subr.bf16.mxu1 %v4742_v22 }
 0x271   :  { %1782 = vmatprep.mubr.bf16.mxu1 %v1590_v21  ;;  %v4761_v21 = vld [vmem:[#allocation10 + $0x168] ss:$36 sps:$4 sm:$0xff]  }
 0x272   :  { %1783 = vmatmul.mubr.bf16.gmra.mrb[12].mxu1 %v1589_v20 }
 0x273   :  { %1935 = vmatprep.mubr.bf16.mxu1 %v5089_v59  ;;  %1916 = vmatpush1.bf16.msra.mxu1 %v4740_v11  ;;  %v4766_v11 = vld [vmem:[#allocation10 + $0x1b4] ss:$36 sps:$4 sm:$0xff]  }
 0x274   :  { %1917 = vmatprep.subr.bf16.mxu1 %v4745_v23 }
 0x277   :  { %1918 = vmatpush1.bf16.msra.mxu1 %v4743_v12 }
 0x278   :  { %2337 = vmatprep.subr.bf16.mxu1 %v4748_v24  ;;  %v4764_v24 = vld [vmem:[#allocation10 + $0x1b0] ss:$36 sps:$4 sm:$0xff]  }
 0x32d   :  { %v4201_v36 = vpop.f32.mrb[0].mxu1 }
 0x32e   :  { %v4202_v37 = vpop.f32.mrb[1].mxu1 }
 0x32f   :  { %v4203_v38 = vadd.f32 %v4202_v37, %v4201_v36  ;;  %v4204_v39 = vpop.f32.mrb[2].mxu1  ;;  %v4790_v36 = vld [vmem:[#allocation10 + $0x360] ss:$36 sps:$4 sm:$0xff]   ;;  %v4797_v37 = vld [vmem:[#allocation10 + $0x3ac] ss:$36 sps:$4 sm:$0xff]  }
 0x330   :  { %v4205_v41 = vpop.f32.mrb[3].mxu1 }
 0x331   :  { %v4206_v42 = vadd.f32 %v4205_v41, %v4204_v39  ;;  %v1761_v43 = vadd.f32 %v4203_v38, %v3912_v40  ;;  %v4795_v38 = vld [vmem:[#allocation10 + $0x3a8] ss:$36 sps:$4 sm:$0xff]   ;;  %v4800_v41 = vld [vmem:[#allocation10 + $0x3f0] ss:$36 sps:$4 sm:$0xff]  }
 0x332   :  { %v4799_v39 = vld [vmem:[#allocation10 + $0x188] ss:$36 sps:$4 sm:$0xff]  }
 0x333   :  { %v1764_v44 = vadd.f32 %v4206_v42, %v3912_v40  ;;  %4316 = vmatpush3.bf16.msra.mxu0 %v4799_v39  ;;  %v4803_v42 = vld [vmem:[#allocation10 + $0x410] ss:$36 sps:$4 sm:$0xff]  }
 0x334   :  { %4317 = vmatprep.subr.bf16.mxu0 %v4803_v42  ;;  %v4819_v42 = vld [vmem:[#allocation10 + $0x128] ss:$36 sps:$4 sm:$0xff]  }
 0x335   :  { %v1791_v46 = vpack.c.bf16 %v1764_v44, %v1761_v43  ;;  %v4207_v47 = vpop.f32.mrb[4].mxu1  ;;  %v4804_v43 = vld [vmem:[#allocation10 + $0x1d0] ss:$36 sps:$4 sm:$0xff]   ;;  %v4807_v44 = vld [vmem:[#allocation10 + $0x43c] ss:$36 sps:$4 sm:$0xff]  }
 0x336   :  { %v4208_v49 = vpop.f32.mrb[5].mxu1 }
 0x337   :  { %v4209_v50 = vadd.f32 %v4208_v49, %v4207_v47  ;;  %v4210_v51 = vpop.f32.mrb[6].mxu1  ;;  %1936 = vmatmul.mubr.bf16.vlgmr.msra.gmra.mrb[16].mxu1 %v1791_v46  ;;  %4318 = vmatpush3.bf16.msra.mxu0 %v4804_v43  ;;  %v4808_v46 = vld [vmem:[#allocation10 + $0x458] ss:$36 sps:$4 sm:$0xff]   ;;  %v1811_v49 = vld [vmem:[%s5422_s6] sm:$0x3] }
 0x338   :  { %v4211_v52 = vpop.f32.mrb[7].mxu1  ;;  %1945 = vmatprep.mubr.bf16.mxu1 %v5089_v59  ;;  %2338 = vmatpush1.bf16.msra.mxu1 %v4746_v45  ;;  %v4805_v45 = vld [vmem:[#allocation10 + $0x438] ss:$36 sps:$4 sm:$0xff]  }
 0x339   :  { %v4212_v54 = vadd.f32 %v4211_v52, %v4210_v51  ;;  %2339 = vmatprep.subr.bf16.mxu1 %v4751_v48  ;;  %v1769_v56 = vadd.f32 %v4209_v50, %v3912_v40  ;;  %v4809_v47 = vld [vmem:[#allocation10 + $0x218] ss:$36 sps:$4 sm:$0xff]   ;;  %4319 = vmatprep.subr.bf16.mxu0 %v4808_v46  ;;  %v4810_v48 = vld [vmem:[#allocation10 + $0x248] ss:$36 sps:$4 sm:$0xff]   ;;  %v5255_v50 = vrot.slane %v1811_v49, %v5214_v8 }
 0x33a   :  { %v5258_v51 = vrot.slane %v1811_v49, %v5220_v10 }
 0x33b   :  { %v1772_v57 = vadd.f32 %v4212_v54, %v3912_v40  ;;  %4320 = vmatpush3.bf16.msra.mxu0 %v4809_v47 }
 0x33c   :  { %2340 = vmatpush1.bf16.msra.mxu1 %v4749_v53 }
 0x33d   :  { %v4213_v60 = vpop.f32.mrb[8].mxu1  ;;  %v1792_v61 = vpack.c.bf16 %v1772_v57, %v1769_v56  ;;  %2341 = vmatprep.subr.bf16.mxu1 %v4754_v55 }
 0x33e   :  { %v4214_v63 = vpop.f32.mrb[9].mxu1 }
 0x33f   :  { %v4215_v0 = vadd.f32 %v4214_v63, %v4213_v60  ;;  %v4216_v1 = vpop.f32.mrb[10].mxu1  ;;  %1946 = vmatmul.mubr.bf16.gmra.mrb[20].mxu1 %v1792_v61 }
 0x340   :  { %v4217_v2 = vpop.f32.mrb[11].mxu1  ;;  %1955 = vmatprep.mubr.bf16.mxu1 %v5089_v59  ;;  %2342 = vmatpush1.bf16.msra.mxu1 %v4752_v58 }
 0x341   :  { %v4218_v4 = vadd.f32 %v4217_v2, %v4216_v1  ;;  %2343 = vmatprep.subr.bf16.mxu1 %v4757_v62  ;;  %v1777_v6 = vadd.f32 %v4215_v0, %v3912_v40 }
 0x343   :  { %v1780_v9 = vadd.f32 %v4218_v4, %v3912_v40  ;;  %v4811_v4 = vld [vmem:[#allocation10 + $0x8] ss:$36 sps:$4 sm:$0xff]  }
 0x344   :  { %2344 = vmatpush1.bf16.msra.mxu1 %v4755_v3 }
 0x345   :  { %v4219_v14 = vpop.f32.mrb[12].mxu1  ;;  %v1793_v15 = vpack.c.bf16 %v1780_v9, %v1777_v6  ;;  %2345 = vmatprep.subr.bf16.mxu1 %v4760_v5  ;;  %v4812_v9 = vld [vmem:[#allocation10 + $0x290] ss:$36 sps:$4 sm:$0xff]  }
 0x346   :  { %v4220_v17 = vpop.f32.mrb[13].mxu1 }
 0x347   :  { %v4221_v18 = vadd.f32 %v4220_v17, %v4219_v14  ;;  %v4222_v19 = vpop.f32.mrb[14].mxu1  ;;  %1956 = vmatmul.mubr.bf16.gmra.mrb[24].mxu1 %v1793_v15 }
 0x348   :  { %v4223_v20 = vpop.f32.mrb[15].mxu1  ;;  %1965 = vmatprep.mubr.bf16.mxu1 %v5089_v59  ;;  %2346 = vmatpush1.bf16.msra.mxu1 %v4758_v13  ;;  %v4777_v59 = vld [vmem:[#allocation10 + $0x28c] ss:$36 sps:$4 sm:$0xff]  }
 0x349   :  { %v4224_v22 = vadd.f32 %v4223_v20, %v4222_v19  ;;  %2347 = vmatprep.subr.bf16.mxu1 %v4763_v16  ;;  %v1785_v23 = vadd.f32 %v4221_v18, %v3912_v40  ;;  %v4813_v18 = vld [vmem:[#allocation10 + $0x50] ss:$36 sps:$4 sm:$0xff]  }
 0x34b   :  { %v1788_v12 = vadd.f32 %v4224_v22, %v3912_v40  ;;  %v4802_v40 = vld [vmem:[#allocation10 + $0x3f4] ss:$36 sps:$4 sm:$0xff]  }
 0x34c   :  { %2348 = vmatpush1.bf16.msra.mxu1 %v4761_v21  ;;  %v4814_v21 = vld [vmem:[#allocation10 + $0x2d8] ss:$36 sps:$4 sm:$0xff]  }
 0x34d   :  { %v1794_v25 = vpack.c.bf16 %v1788_v12, %v1785_v23  ;;  %2349 = vmatprep.subr.bf16.mxu1 %v4766_v11 }
 0x34f   :  { %1966 = vmatmul.mubr.bf16.gmra.mrb[28].mxu1 %v1794_v25  ;;  %v4815_v25 = vld [vmem:[#allocation10 + $0x98] ss:$36 sps:$4 sm:$0xff]  }
 0x350   :  { %2350 = vmatpush1.bf16.msra.mxu1 %v4764_v24 }
 0x351   :  { %2351 = vmatprep.subr.bf16.mxu1 %v4769_v26 }
 0x354   :  { %2352 = vmatpush1.bf16.msra.mxu1 %v4767_v27 }
 0x355   :  { %2353 = vmatprep.subr.bf16.mxu1 %v4772_v28  ;;  %v4816_v28 = vld [vmem:[#allocation10 + $0x320] ss:$36 sps:$4 sm:$0xff]  }
 0x358   :  { %2354 = vmatpush1.bf16.msra.mxu1 %v4770_v29 }
 0x359   :  { %2355 = vmatprep.subr.bf16.mxu1 %v4777_v59 }
 0x35c   :  { %2356 = vmatpush1.bf16.msra.mxu1 %v4775_v30 }
 0x35d   :  { %2357 = vmatprep.subr.bf16.mxu1 %v4782_v31 }
 0x360   :  { %2358 = vmatpush1.bf16.msra.mxu1 %v4780_v32 }
 0x361   :  { %2359 = vmatprep.subr.bf16.mxu1 %v4787_v33  ;;  %v4817_v33 = vld [vmem:[#allocation10 + $0xe0] ss:$36 sps:$4 sm:$0xff]  }
 0x364   :  { %2360 = vmatpush1.bf16.msra.mxu1 %v4785_v34 }
 0x365   :  { %2361 = vmatprep.subr.bf16.mxu1 %v4792_v35 }
 0x368   :  { %2362 = vmatpush1.bf16.msra.mxu1 %v4790_v36  ;;  %v4818_v36 = vld [vmem:[#allocation10 + $0x368] ss:$36 sps:$4 sm:$0xff]  }
 0x369   :  { %2363 = vmatprep.subr.bf16.mxu1 %v4797_v37 }
 0x36c   :  { %2364 = vmatpush1.bf16.msra.mxu1 %v4795_v38 }
 0x36d   :  { %2365 = vmatprep.subr.bf16.mxu1 %v4802_v40 }
 0x370   :  { %2366 = vmatpush1.bf16.msra.mxu1 %v4800_v41 }
 0x371   :  { %2367 = vmatprep.subr.bf16.mxu1 %v4807_v44 }
 0x374   :  { %2368 = vmatpush1.bf16.msra.mxu1 %v4805_v45  ;;  %v4820_v45 = vld [vmem:[#allocation10 + $0x3b0] ss:$36 sps:$4 sm:$0xff]  }
 0x375   :  { %4225 = vmatprep.subr.bf16.mxu1 %v4810_v48 }
 0x40a   :  { %v1937_v52 = vpop.f32.mrb[16].mxu1 }
 0x40b   :  { %v1938_v53 = vadd.f32 %v1937_v52, %v5255_v50  ;;  %v1939_v54 = vpop.f32.mrb[17].mxu1 }
 0x40c   :  { %v1940_v55 = vadd.f32 %v1939_v54, %v5258_v51  ;;  %v1941_v56 = vpop.f32.mrb[18].mxu1 }
 0x40d   :  { %v1942_v57 = vadd.f32 %v1941_v56, %v5255_v50  ;;  %v1943_v58 = vpop.f32.mrb[19].mxu1  ;;  %v1976_v61 = vmax.f32 %v1938_v53, 0.0  ;;  %v4821_v53 = vld [vmem:[#allocation10 + $0x170] ss:$36 sps:$4 sm:$0xff]   ;;  %v4822_v56 = vld [vmem:[#allocation10 + $0x3f8] ss:$36 sps:$4 sm:$0xff]  }
 0x40e   :  { %v1944_v60 = vadd.f32 %v1943_v58, %v5258_v51  ;;  %v1977_v63 = vmax.f32 %v1940_v55, 0.0 }
 0x40f   :  { %v1978_v62 = vmax.f32 %v1942_v57, 0.0 }
 0x410   :  { %v1979_v0 = vmax.f32 %v1944_v60, 0.0 }
 0x411   :  { %v5264_v1 = vpack.c.bf16 %v1978_v62, %v1976_v61  ;;  %v4824_v62 = vld [vmem:[#allocation10 + $0x440] ss:$36 sps:$4 sm:$0xff]  }
 0x412   :  { %v5266_v2 = vpack.c.bf16 %v1979_v0, %v1977_v63  ;;  %v1947_v3 = vpop.f32.mrb[20].mxu1  ;;  %v4828_v63 = vld [vmem:[#allocation10 + $0x10] ss:$36 sps:$4 sm:$0xff]  }
 0x413   :  { %v1948_v5 = vadd.f32 %v1947_v3, %v5255_v50  ;;  %v1949_v6 = vpop.f32.mrb[21].mxu1  ;;  %v4826_v0 = vld [vmem:[#allocation10 + $0xc] ss:$36 sps:$4 sm:$0xff]   ;;  %v4831_v3 = vld [vmem:[#allocation10 + $0x58] ss:$36 sps:$4 sm:$0xff]  }
 0x414   :  { %v1950_v13 = vadd.f32 %v1949_v6, %v5258_v51  ;;  %v1951_v14 = vpop.f32.mrb[22].mxu1  ;;  %2369 = vmatprep.mubr.bf16.mxu1 %v5266_v2  ;;  %3584 = vmatprep.mubr.bf16.mxu0 %v5266_v2  ;;  %v4832_v6 = vld [vmem:[#allocation10 + $0x9c] ss:$36 sps:$4 sm:$0xff]  }
 0x415   :  { %v1952_v15 = vadd.f32 %v1951_v14, %v5255_v50  ;;  %v1953_v16 = vpop.f32.mrb[23].mxu1  ;;  %2370 = vmatmul.mubr.bf16.vlgmr.msra.gmra.mrb[32].mxu1 %v5264_v1  ;;  %3585 = vmatmul.mubr.bf16.vlgmr.msra.gmra.mrb[16].mxu0 %v5264_v1  ;;  %v1980_v19 = vmax.f32 %v1948_v5, 0.0  ;;  %v4834_v5 = vld [vmem:[#allocation10 + $0xa0] ss:$36 sps:$4 sm:$0xff]   ;;  %v4840_v14 = vld [vmem:[#allocation10 + $0x130] ss:$36 sps:$4 sm:$0xff]  }
 0x416   :  { %v1954_v17 = vadd.f32 %v1953_v16, %v5258_v51  ;;  %4226 = vmatpush3.bf16.msra.mxu1 %v4811_v4  ;;  %v1981_v22 = vmax.f32 %v1950_v13, 0.0  ;;  %v4829_v4 = vld [vmem:[#allocation10 + $0x54] ss:$36 sps:$4 sm:$0xff]   ;;  %v4835_v13 = vld [vmem:[#allocation10 + $0xe4] ss:$36 sps:$4 sm:$0xff]  }
 0x417   :  { %v1982_v20 = vmax.f32 %v1952_v15, 0.0  ;;  %4227 = vmatprep.subr.bf16.mxu1 %v4812_v9  ;;  %v4837_v9 = vld [vmem:[#allocation10 + $0xe8] ss:$36 sps:$4 sm:$0xff]   ;;  %v4843_v16 = vld [vmem:[#allocation10 + $0x178] ss:$36 sps:$4 sm:$0xff]  }
 0x418   :  { %v1983_v11 = vmax.f32 %v1954_v17, 0.0  ;;  %v4838_v15 = vld [vmem:[#allocation10 + $0x12c] ss:$36 sps:$4 sm:$0xff]   ;;  %v4841_v17 = vld [vmem:[#allocation10 + $0x174] ss:$36 sps:$4 sm:$0xff]  }
 0x419   :  { %v5276_v23 = vpack.c.bf16 %v1982_v20, %v1980_v19  ;;  %v4844_v19 = vld [vmem:[#allocation10 + $0x1bc] ss:$36 sps:$4 sm:$0xff]   ;;  %v4849_v20 = vld [vmem:[#allocation10 + $0x208] ss:$36 sps:$4 sm:$0xff]  }
 0x41a   :  { %v5278_v12 = vpack.c.bf16 %v1983_v11, %v1981_v22  ;;  %4228 = vmatpush3.bf16.msra.mxu1 %v4813_v18  ;;  %v1957_v24 = vpop.f32.mrb[24].mxu1  ;;  %v4846_v18 = vld [vmem:[#allocation10 + $0x1c0] ss:$36 sps:$4 sm:$0xff]   ;;  %v4852_v22 = vld [vmem:[#allocation10 + $0x250] ss:$36 sps:$4 sm:$0xff]  }
 0x41b   :  { %v1958_v26 = vadd.f32 %v1957_v24, %v5255_v50  ;;  %v1959_v27 = vpop.f32.mrb[25].mxu1  ;;  %4229 = vmatprep.subr.bf16.mxu1 %v4814_v21  ;;  %v4847_v21 = vld [vmem:[#allocation10 + $0x204] ss:$36 sps:$4 sm:$0xff]   ;;  %v4850_v11 = vld [vmem:[#allocation10 + $0x24c] ss:$36 sps:$4 sm:$0xff]  }
 0x41c   :  { %v1960_v29 = vadd.f32 %v1959_v27, %v5258_v51  ;;  %v1961_v59 = vpop.f32.mrb[26].mxu1  ;;  %2379 = vmatprep.mubr.bf16.mxu1 %v5278_v12  ;;  %3592 = vmatprep.mubr.bf16.mxu0 %v5278_v12  ;;  %v4855_v24 = vld [vmem:[#allocation10 + $0x298] ss:$36 sps:$4 sm:$0xff]  }
 0x41d   :  { %v1962_v30 = vadd.f32 %v1961_v59, %v5255_v50  ;;  %v1963_v31 = vpop.f32.mrb[27].mxu1  ;;  %2380 = vmatmul.mubr.bf16.gmra.mrb[36].mxu1 %v5276_v23  ;;  %3593 = vmatmul.mubr.bf16.gmra.mrb[20].mxu0 %v5276_v23  ;;  %v1984_v34 = vmax.f32 %v1958_v26, 0.0  ;;  %v4858_v26 = vld [vmem:[#allocation10 + $0x2e0] ss:$36 sps:$4 sm:$0xff]   ;;  %v4864_v59 = vld [vmem:[#allocation10 + $0x370] ss:$36 sps:$4 sm:$0xff]  }
 0x41e   :  { %v1964_v32 = vadd.f32 %v1963_v31, %v5258_v51  ;;  %4230 = vmatpush3.bf16.msra.mxu1 %v4815_v25  ;;  %v1985_v37 = vmax.f32 %v1960_v29, 0.0  ;;  %v4853_v25 = vld [vmem:[#allocation10 + $0x294] ss:$36 sps:$4 sm:$0xff]   ;;  %v4856_v27 = vld [vmem:[#allocation10 + $0x2dc] ss:$36 sps:$4 sm:$0xff]  }
 0x41f   :  { %v1986_v35 = vmax.f32 %v1962_v30, 0.0  ;;  %4231 = vmatprep.subr.bf16.mxu1 %v4816_v28  ;;  %v4861_v28 = vld [vmem:[#allocation10 + $0x328] ss:$36 sps:$4 sm:$0xff]   ;;  %v4867_v31 = vld [vmem:[#allocation10 + $0x3b8] ss:$36 sps:$4 sm:$0xff]  }
 0x420   :  { %v1987_v38 = vmax.f32 %v1964_v32, 0.0  ;;  %v4859_v29 = vld [vmem:[#allocation10 + $0x324] ss:$36 sps:$4 sm:$0xff]   ;;  %v4862_v30 = vld [vmem:[#allocation10 + $0x36c] ss:$36 sps:$4 sm:$0xff]  }
 0x421   :  { %v5288_v39 = vpack.c.bf16 %v1986_v35, %v1984_v34  ;;  %v4865_v32 = vld [vmem:[#allocation10 + $0x3b4] ss:$36 sps:$4 sm:$0xff]   ;;  %v4868_v34 = vld [vmem:[#allocation10 + $0x3fc] ss:$36 sps:$4 sm:$0xff]   ;;  %v4873_v35 = vld [vmem:[#allocation10 + $0x448] ss:$36 sps:$4 sm:$0xff]  }
 0x422   :  { %v5290_v40 = vpack.c.bf16 %v1987_v38, %v1985_v37  ;;  %4232 = vmatpush3.bf16.msra.mxu1 %v4817_v33  ;;  %v1967_v41 = vpop.f32.mrb[28].mxu1  ;;  %v4870_v33 = vld [vmem:[#allocation10 + $0x400] ss:$36 sps:$4 sm:$0xff]   ;;  %v4874_v37 = vld [vmem:[#allocation10 + $0x254] ss:$36 sps:$4 sm:$0xff]  }
 0x423   :  { %v1968_v43 = vadd.f32 %v1967_v41, %v5255_v50  ;;  %v1969_v44 = vpop.f32.mrb[29].mxu1  ;;  %4233 = vmatprep.subr.bf16.mxu1 %v4818_v36  ;;  %v4871_v36 = vld [vmem:[#allocation10 + $0x444] ss:$36 sps:$4 sm:$0xff]   ;;  %v4875_v38 = vld [vmem:[#allocation10 + $0x14] ss:$36 sps:$4 sm:$0xff]  }
 0x424   :  { %v1970_v46 = vadd.f32 %v1969_v44, %v5258_v51  ;;  %v1971_v47 = vpop.f32.mrb[30].mxu1  ;;  %2389 = vmatprep.mubr.bf16.mxu1 %v5290_v40  ;;  %3600 = vmatprep.mubr.bf16.mxu0 %v5290_v40  ;;  %v4876_v41 = vld [vmem:[#allocation10 + $0x29c] ss:$36 sps:$4 sm:$0xff]   ;;  %v4879_v44 = vld [vmem:[#allocation10 + $0xa4] ss:$36 sps:$4 sm:$0xff]  }
 0x425   :  { %v1972_v48 = vadd.f32 %v1971_v47, %v5255_v50  ;;  %v1973_v49 = vpop.f32.mrb[31].mxu1  ;;  %2390 = vmatmul.mubr.bf16.gmra.mrb[40].mxu1 %v5288_v39  ;;  %3601 = vmatmul.mubr.bf16.gmra.mrb[24].mxu0 %v5288_v39  ;;  %v1988_v54 = vmax.f32 %v1968_v43, 0.0  ;;  %v4823_v50 = vld [vmem:[#allocation10 + $0x1b8] ss:$36 sps:$4 sm:$0xff]   ;;  %v4878_v43 = vld [vmem:[#allocation10 + $0x2e4] ss:$36 sps:$4 sm:$0xff]  }
 0x426   :  { %v1974_v52 = vadd.f32 %v1973_v49, %v5258_v51  ;;  %4234 = vmatpush3.bf16.msra.mxu1 %v4819_v42  ;;  %v1989_v57 = vmax.f32 %v1970_v46, 0.0  ;;  %v4825_v51 = vld [vmem:[#allocation10 + $0x200] ss:$36 sps:$4 sm:$0xff]   ;;  %v4881_v46 = vld [vmem:[#allocation10 + $0xec] ss:$36 sps:$4 sm:$0xff]  }
 0x427   :  { %v1990_v55 = vmax.f32 %v1972_v48, 0.0  ;;  %4235 = vmatprep.subr.bf16.mxu1 %v4820_v45  ;;  %v4877_v42 = vld [vmem:[#allocation10 + $0x5c] ss:$36 sps:$4 sm:$0xff]   ;;  %v4880_v45 = vld [vmem:[#allocation10 + $0x32c] ss:$36 sps:$4 sm:$0xff]  }
 0x428   :  { %v1991_v58 = vmax.f32 %v1974_v52, 0.0  ;;  %v4882_v47 = vld [vmem:[#allocation10 + $0x374] ss:$36 sps:$4 sm:$0xff]   ;;  %v4884_v49 = vld [vmem:[#allocation10 + $0x3bc] ss:$36 sps:$4 sm:$0xff]  }
 0x429   :  { %v5300_v60 = vpack.c.bf16 %v1990_v55, %v1988_v54  ;;  %v4883_v48 = vld [vmem:[#allocation10 + $0x134] ss:$36 sps:$4 sm:$0xff]   ;;  %v4885_v52 = vld [vmem:[#allocation10 + $0x17c] ss:$36 sps:$4 sm:$0xff]   ;;  %v4887_v54 = vld [vmem:[#allocation10 + $0x1c4] ss:$36 sps:$4 sm:$0xff]  }
 0x42a   :  { %v5302_v61 = vpack.c.bf16 %v1991_v58, %v1989_v57  ;;  %4236 = vmatpush3.bf16.msra.mxu1 %v4821_v53  ;;  %v4886_v53 = vld [vmem:[#allocation10 + $0x404] ss:$36 sps:$4 sm:$0xff]   ;;  %v4888_v55 = vld [vmem:[#allocation10 + $0x44c] ss:$36 sps:$4 sm:$0xff]   ;;  %v4892_v57 = vld [vmem:[#allocation10 + $0x1c] ss:$36 sps:$4 sm:$0xff]  }
 0x42b   :  { %4237 = vmatprep.subr.bf16.mxu1 %v4822_v56  ;;  %v4889_v56 = vld [vmem:[#allocation10 + $0x20c] ss:$36 sps:$4 sm:$0xff]   ;;  %v4890_v58 = vld [vmem:[#allocation10 + $0x18] ss:$36 sps:$4 sm:$0xff]  }
 0x42c   :  { %2399 = vmatprep.mubr.bf16.mxu1 %v5302_v61  ;;  %3608 = vmatprep.mubr.bf16.mxu0 %v5302_v61 }
 0x42d   :  { %2400 = vmatmul.mubr.bf16.gmra.mrb[44].mxu1 %v5300_v60  ;;  %3609 = vmatmul.mubr.bf16.gmra.mrb[28].mxu0 %v5300_v60 }
 0x42e   :  { %4238 = vmatpush3.bf16.msra.mxu1 %v4823_v50  ;;  %2442 = vmatprep.mubr.bf16.mxu1 %v5266_v2  ;;  %v4895_v50 = vld [vmem:[#allocation10 + $0x64] ss:$36 sps:$4 sm:$0xff]  }
 0x42f   :  { %4239 = vmatprep.subr.bf16.mxu1 %v4824_v62  ;;  %v4893_v62 = vld [vmem:[#allocation10 + $0x60] ss:$36 sps:$4 sm:$0xff]  }
 0x432   :  { %4240 = vmatpush3.bf16.msra.mxu1 %v4825_v51  ;;  %v4898_v51 = vld [vmem:[#allocation10 + $0xac] ss:$36 sps:$4 sm:$0xff]  }
 0x433   :  { %2908 = vmatprep.subr.bf16.mxu1 %v4828_v63  ;;  %v4896_v63 = vld [vmem:[#allocation10 + $0xa8] ss:$36 sps:$4 sm:$0xff]  }
 0x435   :  { %2443 = vmatmul.mubr.bf16.vlgmr.msra.gmra.mrb[48].mxu1 %v5264_v1 }
 0x436   :  { %2909 = vmatpush1.bf16.msra.mxu1 %v4826_v0  ;;  %2450 = vmatprep.mubr.bf16.mxu1 %v5278_v12  ;;  %v4901_v0 = vld [vmem:[#allocation10 + $0xf4] ss:$36 sps:$4 sm:$0xff]  }
 0x437   :  { %2910 = vmatprep.subr.bf16.mxu1 %v4831_v3  ;;  %v4899_v3 = vld [vmem:[#allocation10 + $0xf0] ss:$36 sps:$4 sm:$0xff]  }
 0x43a   :  { %2911 = vmatpush1.bf16.msra.mxu1 %v4829_v4  ;;  %v4904_v4 = vld [vmem:[#allocation10 + $0x13c] ss:$36 sps:$4 sm:$0xff]  }
 0x43b   :  { %2912 = vmatprep.subr.bf16.mxu1 %v4834_v5  ;;  %v4902_v5 = vld [vmem:[#allocation10 + $0x138] ss:$36 sps:$4 sm:$0xff]  }
 0x43d   :  { %2451 = vmatmul.mubr.bf16.gmra.mrb[52].mxu1 %v5276_v23 }
 0x43e   :  { %2913 = vmatpush1.bf16.msra.mxu1 %v4832_v6  ;;  %2458 = vmatprep.mubr.bf16.mxu1 %v5290_v40  ;;  %v4907_v6 = vld [vmem:[#allocation10 + $0x184] ss:$36 sps:$4 sm:$0xff]  }
 0x43f   :  { %2914 = vmatprep.subr.bf16.mxu1 %v4837_v9  ;;  %v4905_v9 = vld [vmem:[#allocation10 + $0x180] ss:$36 sps:$4 sm:$0xff]  }
 0x442   :  { %2915 = vmatpush1.bf16.msra.mxu1 %v4835_v13  ;;  %v4910_v13 = vld [vmem:[#allocation10 + $0x1cc] ss:$36 sps:$4 sm:$0xff]  }
 0x443   :  { %2916 = vmatprep.subr.bf16.mxu1 %v4840_v14  ;;  %v4908_v14 = vld [vmem:[#allocation10 + $0x1c8] ss:$36 sps:$4 sm:$0xff]  }
 0x445   :  { %2459 = vmatmul.mubr.bf16.gmra.mrb[56].mxu1 %v5288_v39 }
 0x446   :  { %2917 = vmatpush1.bf16.msra.mxu1 %v4838_v15  ;;  %2466 = vmatprep.mubr.bf16.mxu1 %v5302_v61  ;;  %v4913_v15 = vld [vmem:[#allocation10 + $0x214] ss:$36 sps:$4 sm:$0xff]  }
 0x447   :  { %2918 = vmatprep.subr.bf16.mxu1 %v4843_v16  ;;  %v4911_v16 = vld [vmem:[#allocation10 + $0x210] ss:$36 sps:$4 sm:$0xff]  }
 0x44a   :  { %2919 = vmatpush1.bf16.msra.mxu1 %v4841_v17  ;;  %v4916_v17 = vld [vmem:[#allocation10 + $0x25c] ss:$36 sps:$4 sm:$0xff]  }
 0x44b   :  { %2920 = vmatprep.subr.bf16.mxu1 %v4846_v18  ;;  %v4914_v18 = vld [vmem:[#allocation10 + $0x258] ss:$36 sps:$4 sm:$0xff]  }
 0x44d   :  { %2467 = vmatmul.mubr.bf16.gmra.mrb[60].mxu1 %v5300_v60 }
 0x44e   :  { %2921 = vmatpush1.bf16.msra.mxu1 %v4844_v19  ;;  %2940 = vmatprep.mubr.bf16.mxu1 %v5266_v2  ;;  %v4919_v19 = vld [vmem:[#allocation10 + $0x2a4] ss:$36 sps:$4 sm:$0xff]  }
 0x44f   :  { %2922 = vmatprep.subr.bf16.mxu1 %v4849_v20  ;;  %v4917_v20 = vld [vmem:[#allocation10 + $0x2a0] ss:$36 sps:$4 sm:$0xff]  }
 0x452   :  { %2923 = vmatpush1.bf16.msra.mxu1 %v4847_v21  ;;  %v4922_v21 = vld [vmem:[#allocation10 + $0x2ec] ss:$36 sps:$4 sm:$0xff]  }
 0x453   :  { %2924 = vmatprep.subr.bf16.mxu1 %v4852_v22  ;;  %v4920_v22 = vld [vmem:[#allocation10 + $0x2e8] ss:$36 sps:$4 sm:$0xff]  }
 0x456   :  { %2925 = vmatpush1.bf16.msra.mxu1 %v4850_v11  ;;  %v4925_v11 = vld [vmem:[#allocation10 + $0x334] ss:$36 sps:$4 sm:$0xff]  }
 0x457   :  { %2926 = vmatprep.subr.bf16.mxu1 %v4855_v24  ;;  %v4923_v24 = vld [vmem:[#allocation10 + $0x330] ss:$36 sps:$4 sm:$0xff]  }
 0x45a   :  { %2927 = vmatpush1.bf16.msra.mxu1 %v4853_v25  ;;  %v4928_v25 = vld [vmem:[#allocation10 + $0x37c] ss:$36 sps:$4 sm:$0xff]  }
 0x45b   :  { %2928 = vmatprep.subr.bf16.mxu1 %v4858_v26  ;;  %v4931_v26 = vld [vmem:[#allocation10 + $0x3c4] ss:$36 sps:$4 sm:$0xff]  }
 0x45e   :  { %2929 = vmatpush1.bf16.msra.mxu1 %v4856_v27  ;;  %v4929_v27 = vld [vmem:[#allocation10 + $0x3c0] ss:$36 sps:$4 sm:$0xff]  }
 0x45f   :  { %2930 = vmatprep.subr.bf16.mxu1 %v4861_v28  ;;  %v4934_v28 = vld [vmem:[#allocation10 + $0x40c] ss:$36 sps:$4 sm:$0xff]  }
 0x462   :  { %2931 = vmatpush1.bf16.msra.mxu1 %v4859_v29  ;;  %v4932_v29 = vld [vmem:[#allocation10 + $0x408] ss:$36 sps:$4 sm:$0xff]  }
 0x463   :  { %2932 = vmatprep.subr.bf16.mxu1 %v4864_v59  ;;  %v4937_v59 = vld [vmem:[#allocation10 + $0x454] ss:$36 sps:$4 sm:$0xff]  }
 0x466   :  { %2933 = vmatpush1.bf16.msra.mxu1 %v4862_v30  ;;  %v4935_v30 = vld [vmem:[#allocation10 + $0x450] ss:$36 sps:$4 sm:$0xff]  }
 0x467   :  { %2934 = vmatprep.subr.bf16.mxu1 %v4867_v31  ;;  %v5340_v31 = vld [vmem:[%s5424_s8] sm:$0x7] }
 0x46a   :  { %2935 = vmatpush1.bf16.msra.mxu1 %v4865_v32  ;;  %v5343_v32 = vsub.s32 2, %v5211_v7 }
 0x46b   :  { %2936 = vmatprep.subr.bf16.mxu1 %v4870_v33  ;;  %v5348_v33 = vrot.slane %v5340_v31, %v5214_v8 }
 0x46e   :  { %2937 = vmatpush1.bf16.msra.mxu1 %v4868_v34 }
 0x46f   :  { %2938 = vmatprep.subr.bf16.mxu1 %v4873_v35 }
 0x472   :  { %2939 = vmatpush1.bf16.msra.mxu1 %v4871_v36 }
 0x473   :  { %4265 = vmatprep.subr.bf16.mxu1 %v4874_v37 }
 0x475   :  { %2941 = vmatmul.mubr.bf16.vlgmr.msra.gmra.mrb[64].mxu1 %v5264_v1 }
 0x476   :  { %2950 = vmatprep.mubr.bf16.mxu1 %v5278_v12  ;;  %4266 = vmatpush3.bf16.msra.mxu1 %v4875_v38 }
 0x477   :  { %4267 = vmatprep.subr.bf16.mxu1 %v4876_v41 }
 0x47a   :  { %4268 = vmatpush3.bf16.msra.mxu1 %v4877_v42 }
 0x47b   :  { %4269 = vmatprep.subr.bf16.mxu1 %v4878_v43 }
 0x47d   :  { %2951 = vmatmul.mubr.bf16.gmra.mrb[68].mxu1 %v5276_v23 }
 0x47e   :  { %2960 = vmatprep.mubr.bf16.mxu1 %v5290_v40  ;;  %4270 = vmatpush3.bf16.msra.mxu1 %v4879_v44 }
 0x47f   :  { %4271 = vmatprep.subr.bf16.mxu1 %v4880_v45 }
 0x482   :  { %4272 = vmatpush3.bf16.msra.mxu1 %v4881_v46 }
 0x483   :  { %4273 = vmatprep.subr.bf16.mxu1 %v4882_v47 }
 0x485   :  { %2961 = vmatmul.mubr.bf16.gmra.mrb[72].mxu1 %v5288_v39 }
 0x486   :  { %2970 = vmatprep.mubr.bf16.mxu1 %v5302_v61  ;;  %4274 = vmatpush3.bf16.msra.mxu1 %v4883_v48 }
 0x487   :  { %4275 = vmatprep.subr.bf16.mxu1 %v4884_v49 }
 0x48a   :  { %4276 = vmatpush3.bf16.msra.mxu1 %v4885_v52 }
 0x48b   :  { %4277 = vmatprep.subr.bf16.mxu1 %v4886_v53 }
 0x48d   :  { %2971 = vmatmul.mubr.bf16.gmra.mrb[76].mxu1 %v5300_v60 }
 0x48e   :  { %4278 = vmatpush3.bf16.msra.mxu1 %v4887_v54  ;;  %3013 = vmatprep.mubr.bf16.mxu1 %v5266_v2 }
 0x48f   :  { %4279 = vmatprep.subr.bf16.mxu1 %v4888_v55 }
 0x492   :  { %4280 = vmatpush3.bf16.msra.mxu1 %v4889_v56 }
 0x493   :  { %3479 = vmatprep.subr.bf16.mxu1 %v4892_v57 }
 0x495   :  { %3014 = vmatmul.mubr.bf16.vlgmr.msra.gmra.mrb[80].mxu1 %v5264_v1 }
 0x496   :  { %3021 = vmatprep.mubr.bf16.mxu1 %v5278_v12  ;;  %3480 = vmatpush1.bf16.msra.mxu1 %v4890_v58 }
 0x497   :  { %3481 = vmatprep.subr.bf16.mxu1 %v4895_v50 }
 0x49a   :  { %3482 = vmatpush1.bf16.msra.mxu1 %v4893_v62 }
 0x49b   :  { %3483 = vmatprep.subr.bf16.mxu1 %v4898_v51 }
 0x49d   :  { %3022 = vmatmul.mubr.bf16.gmra.mrb[84].mxu1 %v5276_v23 }
 0x49e   :  { %3029 = vmatprep.mubr.bf16.mxu1 %v5290_v40  ;;  %3484 = vmatpush1.bf16.msra.mxu1 %v4896_v63 }
 0x49f   :  { %3485 = vmatprep.subr.bf16.mxu1 %v4901_v0 }
 0x4a2   :  { %3486 = vmatpush1.bf16.msra.mxu1 %v4899_v3 }
 0x4a3   :  { %3487 = vmatprep.subr.bf16.mxu1 %v4904_v4 }
 0x4a5   :  { %3030 = vmatmul.mubr.bf16.gmra.mrb[88].mxu1 %v5288_v39 }
 0x4a6   :  { %3037 = vmatprep.mubr.bf16.mxu1 %v5302_v61  ;;  %3488 = vmatpush1.bf16.msra.mxu1 %v4902_v5 }
 0x4a7   :  { %3489 = vmatprep.subr.bf16.mxu1 %v4907_v6 }
 0x4aa   :  { %3490 = vmatpush1.bf16.msra.mxu1 %v4905_v9 }
 0x4ab   :  { %3491 = vmatprep.subr.bf16.mxu1 %v4910_v13 }
 0x4ad   :  { %3038 = vmatmul.mubr.bf16.gmra.mrb[92].mxu1 %v5300_v60 }
 0x4ae   :  { %3492 = vmatpush1.bf16.msra.mxu1 %v4908_v14  ;;  %3511 = vmatprep.mubr.bf16.mxu1 %v5266_v2  ;;  %v4926_v2 = vld [vmem:[#allocation10 + $0x378] ss:$36 sps:$4 sm:$0xff]  }
 0x4af   :  { %3493 = vmatprep.subr.bf16.mxu1 %v4913_v15 }
 0x4b2   :  { %3494 = vmatpush1.bf16.msra.mxu1 %v4911_v16 }
 0x4b3   :  { %3495 = vmatprep.subr.bf16.mxu1 %v4916_v17 }
 0x4b6   :  { %3496 = vmatpush1.bf16.msra.mxu1 %v4914_v18 }
 0x4b7   :  { %3497 = vmatprep.subr.bf16.mxu1 %v4919_v19 }
 0x4ba   :  { %3498 = vmatpush1.bf16.msra.mxu1 %v4917_v20 }
 0x4bb   :  { %3499 = vmatprep.subr.bf16.mxu1 %v4922_v21 }
 0x4be   :  { %3500 = vmatpush1.bf16.msra.mxu1 %v4920_v22 }
 0x4bf   :  { %3501 = vmatprep.subr.bf16.mxu1 %v4925_v11 }
 0x4c2   :  { %3502 = vmatpush1.bf16.msra.mxu1 %v4923_v24 }
 0x4c3   :  { %3503 = vmatprep.subr.bf16.mxu1 %v4928_v25 }
 0x4c6   :  { %3504 = vmatpush1.bf16.msra.mxu1 %v4926_v2 }
 0x4c7   :  { %3505 = vmatprep.subr.bf16.mxu1 %v4931_v26 }
 0x4ca   :  { %3506 = vmatpush1.bf16.msra.mxu1 %v4929_v27 }
 0x4cb   :  { %3507 = vmatprep.subr.bf16.mxu1 %v4934_v28 }
 0x4ce   :  { %3508 = vmatpush1.bf16.msra.mxu1 %v4932_v29 }
 0x4cf   :  { %3509 = vmatprep.subr.bf16.mxu1 %v4937_v59 }
 0x4d2   :  { %3510 = vmatpush1.bf16.msra.mxu1 %v4935_v30 }
 0x4d5   :  { %3512 = vmatmul.mubr.bf16.vlgmr.msra.gmra.mrb[96].mxu1 %v5264_v1  ;;  %v5353_v1 = vld [vmem:[%s5424_s8 + $0x6] sm:$0x7] }
 0x4d6   :  { %3521 = vmatprep.mubr.bf16.mxu1 %v5278_v12 }
 0x4dd   :  { %3522 = vmatmul.mubr.bf16.gmra.mrb[100].mxu1 %v5276_v23  ;;  %v5358_v23 = vrot.slane %v5340_v31, %v5220_v10 }
 0x4de   :  { %3531 = vmatprep.mubr.bf16.mxu1 %v5290_v40 }
 0x4e5   :  { %3532 = vmatmul.mubr.bf16.gmra.mrb[104].mxu1 %v5288_v39  ;;  %v5362_v39 = vrot.slane %v5353_v1, %v5343_v32 }
 0x4e6   :  { %3541 = vmatprep.mubr.bf16.mxu1 %v5302_v61 }
 0x4e8   :  { %v2371_v12 = vpop.f32.mrb[32].mxu1  ;;  %v4321_v7 = vpop.f32.mrb[16].mxu0 }
 0x4e9   :  { %v2372_v40 = vadd.f32 %v2371_v12, %v5348_v33  ;;  %v2373_v34 = vpop.f32.mrb[33].mxu1  ;;  %v4322_v35 = vpop.f32.mrb[17].mxu0 }
 0x4ea   :  { %v2374_v36 = vadd.f32 %v2373_v34, %v5358_v23  ;;  %v4323_v37 = vadd.f32 %v4322_v35, %v4321_v7  ;;  %v2375_v38 = vpop.f32.mrb[34].mxu1  ;;  %v4324_v41 = vpop.f32.mrb[18].mxu0 }
 0x4eb   :  { %v2376_v61 = vadd.f32 %v2375_v38, %v5348_v33  ;;  %v2377_v42 = vpop.f32.mrb[35].mxu1  ;;  %v4325_v43 = vpop.f32.mrb[19].mxu0 }
 0x4ec   :  { %v4137_v44 = vpack.c.bf16 %v2374_v36, %v2372_v40  ;;  %v3587_v45 = vadd.f32 %v4323_v37, %v5362_v39  ;;  %v2378_v46 = vadd.f32 %v2377_v42, %v5358_v23  ;;  %v4326_v47 = vadd.f32 %v4325_v43, %v4324_v41 }
 0x4ed   :  { %3542 = vmatmul.mubr.bf16.gmra.mrb[108].mxu1 %v5300_v60 }
 0x4ee   :  { %2555 = vst [vmem:[#allocation11] sm:$0xff] %v4137_v44  ;;  %v4170_v48 = vpack.c.bf16 %v3587_v45, %v3587_v45  ;;  %v4139_v49 = vpack.c.bf16 %v2378_v46, %v2376_v61  ;;  %v3590_v52 = vadd.f32 %v4326_v47, %v5362_v39 }
 0x4f0   :  { %3698 = vst [vmem:[#allocation11 + $0x20] sm:$0xf] %v4170_v48  ;;  %2557 = vst [vmem:[#allocation11 + $0x24] sm:$0xff] %v4139_v49  ;;  %v4172_v53 = vpack.c.bf16 %v3590_v52, %v3590_v52  ;;  %v2381_v54 = vpop.f32.mrb[36].mxu1  ;;  %v4327_v55 = vpop.f32.mrb[20].mxu0 }
 0x4f1   :  { %v2382_v56 = vadd.f32 %v2381_v54, %v5348_v33  ;;  %v2383_v57 = vpop.f32.mrb[37].mxu1  ;;  %v4328_v58 = vpop.f32.mrb[21].mxu0 }
 0x4f2   :  { %3700 = vst [vmem:[#allocation11 + $0x44] sm:$0xf] %v4172_v53  ;;  %v2384_v50 = vadd.f32 %v2383_v57, %v5358_v23  ;;  %v4329_v62 = vadd.f32 %v4328_v58, %v4327_v55  ;;  %v2385_v51 = vpop.f32.mrb[38].mxu1  ;;  %v4330_v60 = vpop.f32.mrb[22].mxu0 }
 0x4f3   :  { %v2386_v63 = vadd.f32 %v2385_v51, %v5348_v33  ;;  %v2387_v0 = vpop.f32.mrb[39].mxu1  ;;  %v4331_v3 = vpop.f32.mrb[23].mxu0 }
 0x4f4   :  { %v4141_v4 = vpack.c.bf16 %v2384_v50, %v2382_v56  ;;  %v3595_v5 = vadd.f32 %v4329_v62, %v5362_v39  ;;  %v2388_v6 = vadd.f32 %v2387_v0, %v5358_v23  ;;  %v4332_v9 = vadd.f32 %v4331_v3, %v4330_v60 }
 0x4f6   :  { %2559 = vst [vmem:[#allocation11 + $0x48] sm:$0xff] %v4141_v4  ;;  %v4174_v13 = vpack.c.bf16 %v3595_v5, %v3595_v5  ;;  %v4143_v14 = vpack.c.bf16 %v2388_v6, %v2386_v63  ;;  %v3598_v15 = vadd.f32 %v4332_v9, %v5362_v39 }
 0x4f8   :  { %3702 = vst [vmem:[#allocation11 + $0x68] sm:$0xf] %v4174_v13  ;;  %2561 = vst [vmem:[#allocation11 + $0x6c] sm:$0xff] %v4143_v14  ;;  %v4176_v16 = vpack.c.bf16 %v3598_v15, %v3598_v15  ;;  %v2391_v17 = vpop.f32.mrb[40].mxu1  ;;  %v4333_v18 = vpop.f32.mrb[24].mxu0 }
 0x4f9   :  { %v2392_v19 = vadd.f32 %v2391_v17, %v5348_v33  ;;  %v2393_v20 = vpop.f32.mrb[41].mxu1  ;;  %v4334_v21 = vpop.f32.mrb[25].mxu0 }
 0x4fa   :  { %3704 = vst [vmem:[#allocation11 + $0x8c] sm:$0xf] %v4176_v16  ;;  %v2394_v22 = vadd.f32 %v2393_v20, %v5358_v23  ;;  %v4335_v11 = vadd.f32 %v4334_v21, %v4333_v18  ;;  %v2395_v24 = vpop.f32.mrb[42].mxu1  ;;  %v4336_v25 = vpop.f32.mrb[26].mxu0 }
 0x4fb   :  { %v2396_v2 = vadd.f32 %v2395_v24, %v5348_v33  ;;  %v2397_v26 = vpop.f32.mrb[43].mxu1  ;;  %v4337_v27 = vpop.f32.mrb[27].mxu0 }
 0x4fc   :  { %v4145_v28 = vpack.c.bf16 %v2394_v22, %v2392_v19  ;;  %v3603_v29 = vadd.f32 %v4335_v11, %v5362_v39  ;;  %v2398_v59 = vadd.f32 %v2397_v26, %v5358_v23  ;;  %v4338_v30 = vadd.f32 %v4337_v27, %v4336_v25 }
 0x4fe   :  { %2563 = vst [vmem:[#allocation11 + $0x90] sm:$0xff] %v4145_v28  ;;  %v4178_v12 = vpack.c.bf16 %v3603_v29, %v3603_v29  ;;  %v4147_v7 = vpack.c.bf16 %v2398_v59, %v2396_v2  ;;  %v3606_v40 = vadd.f32 %v4338_v30, %v5362_v39 }
 0x500   :  { %3706 = vst [vmem:[#allocation11 + $0xb0] sm:$0xf] %v4178_v12  ;;  %2565 = vst [vmem:[#allocation11 + $0xb4] sm:$0xff] %v4147_v7  ;;  %v4180_v34 = vpack.c.bf16 %v3606_v40, %v3606_v40  ;;  %v2401_v35 = vpop.f32.mrb[44].mxu1  ;;  %v4339_v36 = vpop.f32.mrb[28].mxu0 }
 0x501   :  { %v2402_v37 = vadd.f32 %v2401_v35, %v5348_v33  ;;  %v2403_v38 = vpop.f32.mrb[45].mxu1  ;;  %v4340_v41 = vpop.f32.mrb[29].mxu0 }
 0x502   :  { %3708 = vst [vmem:[#allocation11 + $0xd4] sm:$0xf] %v4180_v34  ;;  %v2404_v61 = vadd.f32 %v2403_v38, %v5358_v23  ;;  %v4341_v42 = vadd.f32 %v4340_v41, %v4339_v36  ;;  %v2405_v43 = vpop.f32.mrb[46].mxu1  ;;  %v4342_v44 = vpop.f32.mrb[30].mxu0  ;;  %v2635_v36 = vld [vmem:[%s5424_s8 + $0x3] sm:$0x7] }
 0x503   :  { %v2406_v45 = vadd.f32 %v2405_v43, %v5348_v33  ;;  %v2407_v46 = vpop.f32.mrb[47].mxu1  ;;  %v4343_v47 = vpop.f32.mrb[31].mxu0  ;;  %v2077_v33 = vrot.slane %v5340_v31, %v5343_v32  ;;  %v2644_v38 = vrot.slane %v2635_v36, %v5220_v10  ;;  %s5090_s8 = smov [#allocation11]  }
 0x504   :  { %v4149_v48 = vpack.c.bf16 %v2404_v61, %v2402_v37  ;;  %v3611_v49 = vadd.f32 %v4341_v42, %v5362_v39  ;;  %v2408_v52 = vadd.f32 %v2407_v46, %v5358_v23  ;;  %v4344_v53 = vadd.f32 %v4343_v47, %v4342_v44  ;;  %s3718_s26 = sshll.u32 %s5090_s8, 4  ;;  %s3719_s26 = int_to_ptr.vmem [resolvable:$true] %s3718_s26 }
 0x505   :  { %v2640_v37 = vrot.slane %v2635_v36, %v5214_v8  ;;  %s5048_s15 = scalar_lea.vmem %s3719_s26, 4608  ;;  %p5053_p13 = scmp.lt.s32.totalorder %s3719_s26, %s3719_s26 }
 0x506   :  { %2567 = vst [vmem:[#allocation11 + $0xd8] sm:$0xff] %v4149_v48  ;;  %v4182_v54 = vpack.c.bf16 %v3611_v49, %v3611_v49  ;;  %v4151_v55 = vpack.c.bf16 %v2408_v52, %v2406_v45  ;;  %v3614_v56 = vadd.f32 %v4344_v53, %v5362_v39  ;;  %p5049_p12 = scmp.ne.s32.totalorder %s3719_s26, %s5048_s15  ;;  %p5054_p0 = scmp.lt.s32.totalorder %s5048_s15, %s5048_s15 }
 0x508   :  { %3710 = vst [vmem:[#allocation11 + $0xf8] sm:$0xf] %v4182_v54  ;;  %2569 = vst [vmem:[#allocation11 + $0xfc] sm:$0xff] %v4151_v55  ;;  %v4184_v57 = vpack.c.bf16 %v3614_v56, %v3614_v56  ;;  %v4241_v58 = vpop.f32.mrb[48].mxu1  ;;  %p5055_p1 = por %p5054_p0, %p5053_p13 }
 0x509   :  { %v4242_v50 = vpop.f32.mrb[49].mxu1 }
 0x50a   :  { %3712 = vst [vmem:[#allocation11 + $0x11c] sm:$0xf] %v4184_v57  ;;  %v4243_v62 = vadd.f32 %v4242_v50, %v4241_v58  ;;  %v4244_v51 = vpop.f32.mrb[50].mxu1  ;;  %p5056_p2 = pnand %p5055_p1, %p5049_p12 }
 0x50b   :  { %v4245_v60 = vpop.f32.mrb[51].mxu1 }
 0x50c   :  { %v2445_v63 = vadd.f32 %v4243_v62, %v2077_v33  ;;  %v4246_v23 = vadd.f32 %v4245_v60, %v4244_v51 }
 0x50e   :  { %v4138_v0 = vpack.c.bf16 %v2445_v63, %v2445_v63  ;;  %v2448_v3 = vadd.f32 %v4246_v23, %v2077_v33 }
 0x510   :  { %2556 = vst [vmem:[#allocation11 + $0x8] sm:$0xf] %v4138_v0  ;;  %v4140_v4 = vpack.c.bf16 %v2448_v3, %v2448_v3  ;;  %v4247_v5 = vpop.f32.mrb[52].mxu1 }
 0x511   :  { %v4248_v39 = vpop.f32.mrb[53].mxu1 }
 0x512   :  { %2558 = vst [vmem:[#allocation11 + $0x2c] sm:$0xf] %v4140_v4  ;;  %v4249_v6 = vadd.f32 %v4248_v39, %v4247_v5  ;;  %v4250_v9 = vpop.f32.mrb[54].mxu1 }
 0x513   :  { %v4251_v13 = vpop.f32.mrb[55].mxu1 }
 0x514   :  { %v2453_v14 = vadd.f32 %v4249_v6, %v2077_v33  ;;  %v4252_v15 = vadd.f32 %v4251_v13, %v4250_v9 }
 0x516   :  { %v4142_v31 = vpack.c.bf16 %v2453_v14, %v2453_v14  ;;  %v2456_v16 = vadd.f32 %v4252_v15, %v2077_v33 }
 0x518   :  { %2560 = vst [vmem:[#allocation11 + $0x50] sm:$0xf] %v4142_v31  ;;  %v4144_v17 = vpack.c.bf16 %v2456_v16, %v2456_v16  ;;  %v4253_v18 = vpop.f32.mrb[56].mxu1 }
 0x519   :  { %v4254_v19 = vpop.f32.mrb[57].mxu1 }
 0x51a   :  { %2562 = vst [vmem:[#allocation11 + $0x74] sm:$0xf] %v4144_v17  ;;  %v4255_v20 = vadd.f32 %v4254_v19, %v4253_v18  ;;  %v4256_v21 = vpop.f32.mrb[58].mxu1 }
 0x51b   :  { %v4257_v22 = vpop.f32.mrb[59].mxu1 }
 0x51c   :  { %v2461_v11 = vadd.f32 %v4255_v20, %v2077_v33  ;;  %v4258_v24 = vadd.f32 %v4257_v22, %v4256_v21  ;;  %v2648_v22 = vrot.slane %v2635_v36, %v5343_v32 }
 0x51e   :  { %v4146_v25 = vpack.c.bf16 %v2461_v11, %v2461_v11  ;;  %v2464_v2 = vadd.f32 %v4258_v24, %v2077_v33 }
 0x520   :  { %2564 = vst [vmem:[#allocation11 + $0x98] sm:$0xf] %v4146_v25  ;;  %v4148_v26 = vpack.c.bf16 %v2464_v2, %v2464_v2  ;;  %v4259_v27 = vpop.f32.mrb[60].mxu1 }
 0x521   :  { %v4260_v28 = vpop.f32.mrb[61].mxu1 }
 0x522   :  { %2566 = vst [vmem:[#allocation11 + $0xbc] sm:$0xf] %v4148_v26  ;;  %v4261_v29 = vadd.f32 %v4260_v28, %v4259_v27  ;;  %v4262_v59 = vpop.f32.mrb[62].mxu1 }
 0x523   :  { %v4263_v30 = vpop.f32.mrb[63].mxu1 }
 0x524   :  { %v2469_v12 = vadd.f32 %v4261_v29, %v2077_v33  ;;  %v4264_v7 = vadd.f32 %v4263_v30, %v4262_v59 }
 0x526   :  { %v4150_v40 = vpack.c.bf16 %v2469_v12, %v2469_v12  ;;  %v2472_v34 = vadd.f32 %v4264_v7, %v2077_v33 }
 0x528   :  { %2568 = vst [vmem:[#allocation11 + $0xe0] sm:$0xf] %v4150_v40  ;;  %v4152_v35 = vpack.c.bf16 %v2472_v34, %v2472_v34 }
 0x52a   :  { %2570 = vst [vmem:[#allocation11 + $0x104] sm:$0xf] %v4152_v35 }
 0x548   :  { %v2942_v41 = vpop.f32.mrb[64].mxu1 }
 0x549   :  { %v2943_v61 = vadd.f32 %v2942_v41, %v2640_v37  ;;  %v2944_v42 = vpop.f32.mrb[65].mxu1 }
 0x54a   :  { %v2945_v43 = vadd.f32 %v2944_v42, %v2644_v38  ;;  %v2946_v44 = vpop.f32.mrb[66].mxu1 }
 0x54b   :  { %v2947_v45 = vadd.f32 %v2946_v44, %v2640_v37  ;;  %v2948_v46 = vpop.f32.mrb[67].mxu1 }
 0x54c   :  { %v4153_v47 = vpack.c.bf16 %v2945_v43, %v2943_v61  ;;  %v2949_v48 = vadd.f32 %v2948_v46, %v2644_v38 }
 0x54e   :  { %3126 = vst [vmem:[#allocation11 + $0xc] sm:$0xff] %v4153_v47  ;;  %v4155_v49 = vpack.c.bf16 %v2949_v48, %v2947_v45 }
 0x550   :  { %3128 = vst [vmem:[#allocation11 + $0x30] sm:$0xff] %v4155_v49  ;;  %v2952_v52 = vpop.f32.mrb[68].mxu1 }
 0x551   :  { %v2953_v53 = vadd.f32 %v2952_v52, %v2640_v37  ;;  %v2954_v54 = vpop.f32.mrb[69].mxu1 }
 0x552   :  { %v2955_v55 = vadd.f32 %v2954_v54, %v2644_v38  ;;  %v2956_v56 = vpop.f32.mrb[70].mxu1 }
 0x553   :  { %v2957_v57 = vadd.f32 %v2956_v56, %v2640_v37  ;;  %v2958_v58 = vpop.f32.mrb[71].mxu1 }
 0x554   :  { %v4157_v33 = vpack.c.bf16 %v2955_v55, %v2953_v53  ;;  %v2959_v50 = vadd.f32 %v2958_v58, %v2644_v38 }
 0x556   :  { %3130 = vst [vmem:[#allocation11 + $0x54] sm:$0xff] %v4157_v33  ;;  %v4159_v62 = vpack.c.bf16 %v2959_v50, %v2957_v57 }
 0x558   :  { %3132 = vst [vmem:[#allocation11 + $0x78] sm:$0xff] %v4159_v62  ;;  %v2962_v51 = vpop.f32.mrb[72].mxu1 }
 0x559   :  { %v2963_v60 = vadd.f32 %v2962_v51, %v2640_v37  ;;  %v2964_v63 = vpop.f32.mrb[73].mxu1  ;;  %v3211_v51 = vrot.slane %v5353_v1, %v5214_v8 }
 0x55a   :  { %v2965_v23 = vadd.f32 %v2964_v63, %v2644_v38  ;;  %v2966_v0 = vpop.f32.mrb[74].mxu1 }
 0x55b   :  { %v2967_v3 = vadd.f32 %v2966_v0, %v2640_v37  ;;  %v2968_v4 = vpop.f32.mrb[75].mxu1 }
 0x55c   :  { %v4161_v5 = vpack.c.bf16 %v2965_v23, %v2963_v60  ;;  %v2969_v39 = vadd.f32 %v2968_v4, %v2644_v38  ;;  %v3215_v60 = vrot.slane %v5353_v1, %v5220_v10 }
 0x55e   :  { %3134 = vst [vmem:[#allocation11 + $0x9c] sm:$0xff] %v4161_v5  ;;  %v4163_v6 = vpack.c.bf16 %v2969_v39, %v2967_v3 }
 0x560   :  { %3136 = vst [vmem:[#allocation11 + $0xc0] sm:$0xff] %v4163_v6  ;;  %v2972_v9 = vpop.f32.mrb[76].mxu1 }
 0x561   :  { %v2973_v13 = vadd.f32 %v2972_v9, %v2640_v37  ;;  %v2974_v14 = vpop.f32.mrb[77].mxu1 }
 0x562   :  { %v2975_v15 = vadd.f32 %v2974_v14, %v2644_v38  ;;  %v2976_v31 = vpop.f32.mrb[78].mxu1 }
 0x563   :  { %v2977_v16 = vadd.f32 %v2976_v31, %v2640_v37  ;;  %v2978_v17 = vpop.f32.mrb[79].mxu1 }
 0x564   :  { %v4165_v18 = vpack.c.bf16 %v2975_v15, %v2973_v13  ;;  %v2979_v19 = vadd.f32 %v2978_v17, %v2644_v38 }
 0x566   :  { %3138 = vst [vmem:[#allocation11 + $0xe4] sm:$0xff] %v4165_v18  ;;  %v4167_v20 = vpack.c.bf16 %v2979_v19, %v2977_v16 }
 0x568   :  { %3140 = vst [vmem:[#allocation11 + $0x108] sm:$0xff] %v4167_v20  ;;  %v4281_v21 = vpop.f32.mrb[80].mxu1 }
 0x569   :  { %v4282_v11 = vpop.f32.mrb[81].mxu1 }
 0x56a   :  { %v4283_v24 = vadd.f32 %v4282_v11, %v4281_v21  ;;  %v4284_v25 = vpop.f32.mrb[82].mxu1 }
 0x56b   :  { %v4285_v2 = vpop.f32.mrb[83].mxu1 }
 0x56c   :  { %v3016_v26 = vadd.f32 %v4283_v24, %v2648_v22  ;;  %v4286_v27 = vadd.f32 %v4285_v2, %v4284_v25 }
 0x56e   :  { %v4154_v28 = vpack.c.bf16 %v3016_v26, %v3016_v26  ;;  %v3019_v29 = vadd.f32 %v4286_v27, %v2648_v22 }
 0x570   :  { %3127 = vst [vmem:[#allocation11 + $0x14] sm:$0xf] %v4154_v28  ;;  %v4156_v59 = vpack.c.bf16 %v3019_v29, %v3019_v29  ;;  %v4287_v30 = vpop.f32.mrb[84].mxu1 }
 0x571   :  { %v4288_v12 = vpop.f32.mrb[85].mxu1 }
 0x572   :  { %3129 = vst [vmem:[#allocation11 + $0x38] sm:$0xf] %v4156_v59  ;;  %v4289_v7 = vadd.f32 %v4288_v12, %v4287_v30  ;;  %v4290_v40 = vpop.f32.mrb[86].mxu1 }
 0x573   :  { %v4291_v34 = vpop.f32.mrb[87].mxu1 }
 0x574   :  { %v3024_v35 = vadd.f32 %v4289_v7, %v2648_v22  ;;  %v4292_v37 = vadd.f32 %v4291_v34, %v4290_v40 }
 0x576   :  { %v4158_v38 = vpack.c.bf16 %v3024_v35, %v3024_v35  ;;  %v3027_v32 = vadd.f32 %v4292_v37, %v2648_v22 }
 0x578   :  { %3131 = vst [vmem:[#allocation11 + $0x5c] sm:$0xf] %v4158_v38  ;;  %v4160_v36 = vpack.c.bf16 %v3027_v32, %v3027_v32  ;;  %v4293_v41 = vpop.f32.mrb[88].mxu1 }
 0x579   :  { %v4294_v61 = vpop.f32.mrb[89].mxu1 }
 0x57a   :  { %3133 = vst [vmem:[#allocation11 + $0x80] sm:$0xf] %v4160_v36  ;;  %v4295_v42 = vadd.f32 %v4294_v61, %v4293_v41  ;;  %v4296_v43 = vpop.f32.mrb[90].mxu1 }
 0x57b   :  { %v4297_v44 = vpop.f32.mrb[91].mxu1 }
 0x57c   :  { %v3032_v45 = vadd.f32 %v4295_v42, %v2648_v22  ;;  %v4298_v46 = vadd.f32 %v4297_v44, %v4296_v43 }
 0x57e   :  { %v4162_v47 = vpack.c.bf16 %v3032_v45, %v3032_v45  ;;  %v3035_v48 = vadd.f32 %v4298_v46, %v2648_v22 }
 0x580   :  { %3135 = vst [vmem:[#allocation11 + $0xa4] sm:$0xf] %v4162_v47  ;;  %v4164_v49 = vpack.c.bf16 %v3035_v48, %v3035_v48  ;;  %v4299_v52 = vpop.f32.mrb[92].mxu1 }
 0x581   :  { %v4300_v53 = vpop.f32.mrb[93].mxu1 }
 0x582   :  { %3137 = vst [vmem:[#allocation11 + $0xc8] sm:$0xf] %v4164_v49  ;;  %v4301_v54 = vadd.f32 %v4300_v53, %v4299_v52  ;;  %v4302_v55 = vpop.f32.mrb[94].mxu1 }
 0x583   :  { %v4303_v56 = vpop.f32.mrb[95].mxu1 }
 0x584   :  { %v3040_v57 = vadd.f32 %v4301_v54, %v2648_v22  ;;  %v4304_v58 = vadd.f32 %v4303_v56, %v4302_v55 }
 0x586   :  { %v4166_v33 = vpack.c.bf16 %v3040_v57, %v3040_v57  ;;  %v3043_v50 = vadd.f32 %v4304_v58, %v2648_v22 }
 0x588   :  { %3139 = vst [vmem:[#allocation11 + $0xec] sm:$0xf] %v4166_v33  ;;  %v4168_v62 = vpack.c.bf16 %v3043_v50, %v3043_v50 }
 0x58a   :  { %3141 = vst [vmem:[#allocation11 + $0x110] sm:$0xf] %v4168_v62 }
 0x5a8   :  { %v3513_v63 = vpop.f32.mrb[96].mxu1 }
 0x5a9   :  { %v3514_v23 = vadd.f32 %v3513_v63, %v3211_v51  ;;  %v3515_v0 = vpop.f32.mrb[97].mxu1 }
 0x5aa   :  { %v3516_v3 = vadd.f32 %v3515_v0, %v3215_v60  ;;  %v3517_v4 = vpop.f32.mrb[98].mxu1 }
 0x5ab   :  { %v3518_v5 = vadd.f32 %v3517_v4, %v3211_v51  ;;  %v3519_v39 = vpop.f32.mrb[99].mxu1 }
 0x5ac   :  { %v4169_v6 = vpack.c.bf16 %v3516_v3, %v3514_v23  ;;  %v3520_v9 = vadd.f32 %v3519_v39, %v3215_v60 }
 0x5ae   :  { %3697 = vst [vmem:[#allocation11 + $0x18] sm:$0xff] %v4169_v6  ;;  %v4171_v13 = vpack.c.bf16 %v3520_v9, %v3518_v5 }
 0x5b0   :  { %3699 = vst [vmem:[#allocation11 + $0x3c] sm:$0xff] %v4171_v13  ;;  %v3523_v14 = vpop.f32.mrb[100].mxu1 }
 0x5b1   :  { %v3524_v15 = vadd.f32 %v3523_v14, %v3211_v51  ;;  %v3525_v31 = vpop.f32.mrb[101].mxu1 }
 0x5b2   :  { %v3526_v16 = vadd.f32 %v3525_v31, %v3215_v60  ;;  %v3527_v8 = vpop.f32.mrb[102].mxu1 }
 0x5b3   :  { %v3528_v17 = vadd.f32 %v3527_v8, %v3211_v51  ;;  %v3529_v18 = vpop.f32.mrb[103].mxu1 }
 0x5b4   :  { %v4173_v10 = vpack.c.bf16 %v3526_v16, %v3524_v15  ;;  %v3530_v1 = vadd.f32 %v3529_v18, %v3215_v60 }
 0x5b6   :  { %3701 = vst [vmem:[#allocation11 + $0x60] sm:$0xff] %v4173_v10  ;;  %v4175_v19 = vpack.c.bf16 %v3530_v1, %v3528_v17 }
 0x5b8   :  { %3703 = vst [vmem:[#allocation11 + $0x84] sm:$0xff] %v4175_v19  ;;  %v3533_v20 = vpop.f32.mrb[104].mxu1 }
 0x5b9   :  { %v3534_v21 = vadd.f32 %v3533_v20, %v3211_v51  ;;  %v3535_v22 = vpop.f32.mrb[105].mxu1 }
 0x5ba   :  { %v3536_v11 = vadd.f32 %v3535_v22, %v3215_v60  ;;  %v3537_v24 = vpop.f32.mrb[106].mxu1 }
 0x5bb   :  { %v3538_v25 = vadd.f32 %v3537_v24, %v3211_v51  ;;  %v3539_v2 = vpop.f32.mrb[107].mxu1 }
 0x5bc   :  { %v4177_v26 = vpack.c.bf16 %v3536_v11, %v3534_v21  ;;  %v3540_v27 = vadd.f32 %v3539_v2, %v3215_v60 }
 0x5be   :  { %3705 = vst [vmem:[#allocation11 + $0xa8] sm:$0xff] %v4177_v26  ;;  %v4179_v28 = vpack.c.bf16 %v3540_v27, %v3538_v25 }
 0x5c0   :  { %3707 = vst [vmem:[#allocation11 + $0xcc] sm:$0xff] %v4179_v28  ;;  %v3543_v29 = vpop.f32.mrb[108].mxu1 }
 0x5c1   :  { %v3544_v59 = vadd.f32 %v3543_v29, %v3211_v51  ;;  %v3545_v30 = vpop.f32.mrb[109].mxu1 }
 0x5c2   :  { %v3546_v12 = vadd.f32 %v3545_v30, %v3215_v60  ;;  %v3547_v7 = vpop.f32.mrb[110].mxu1 }
 0x5c3   :  { %v3548_v40 = vadd.f32 %v3547_v7, %v3211_v51  ;;  %v3549_v34 = vpop.f32.mrb[111].mxu1 }
 0x5c4   :  { %v4181_v35 = vpack.c.bf16 %v3546_v12, %v3544_v59  ;;  %v3550_v37 = vadd.f32 %v3549_v34, %v3215_v60 }
 0x5c6   :  { %3709 = vst [vmem:[#allocation11 + $0xf0] sm:$0xff] %v4181_v35  ;;  %v4183_v38 = vpack.c.bf16 %v3550_v37, %v3548_v40 }
 0x5c8   :  { %3711 = vst [vmem:[#allocation11 + $0x114] sm:$0xff] %v4183_v38 }
 0x5c9   :  { %5059 = shalt.err (!%p5056_p2)
}
 0x5ca   :  { %s5060_s18 = scalar_lea.hbm %s5425_s9, 4608 }
 0x5cb   :  { %p5061_p3 = scmp.ne.s32.totalorder %s5425_s9, %s5060_s18  ;;  %p5064_p4 = scmp.lt.u32.totalorder %s5060_s18, %s5425_s9 }
 0x5cd   :  { %p5066_p5 = pnand %p5064_p4, %p5061_p3 }
 0x5cf   :  { %5069 = shalt.err (!%p5066_p5)
}
 0x5d0   :  { %3724 = dma.vmem_to_hbm [thread:$0]  %s3719_s26, 4608, %s5425_s9, [#allocation4], %s5083_s5, %s5083_s5, %s5084_s19  }
 0x5d1   :  { %5076 = dma.done.wait [#allocation4], 4608  }
 0x5d2   :  { %5077 = vsyncadd [#allocation4], 4294962688 }
 0x5d3   :  { %3728 = vsyncpa [#allocation3], 1 }
 0x5d4   :  { %3729 = vsyncpa [#allocation6], 1 }
 0x5d5   :  { %3730 = vsyncpa [#allocation9], 1 }
 0x5d6   :  { %3731 = vsyncpa [#allocation4], 1 }

</bundles_post_ra>
